<compile_context>
chip_gen: v5e
topology: v5e:2x2
jax: 0.10.0
libtpu: 0.0.40
codegen_flags: <defaults>
</compile_context>

<pallas_src>
import functools

import jax
import jax.numpy as jnp
from jax import lax
from jax.experimental import pallas as pl
from jax.experimental.pallas import tpu as pltpu


def _round_up(v, m):
    return ((v + m - 1) // m) * m


def _pick_tile(dim, pref, unit=128):
    """Largest multiple of `unit` <= pref that divides round_up(dim, unit)."""
    dim_r = _round_up(max(dim, 1), unit)
    t = min(_round_up(max(pref, unit), unit), dim_r)
    while dim_r % t != 0 and t > unit:
        t -= unit
    return t


def _shakeout_matmul_kernel(x_ref, w_ref, m_ref, b_ref, o_ref, acc_ref, *,
                            itau, c, ms_coef):
    """One (OUT-tile j, IN-tile k) step: rewrite W tile once, matmul full batch."""
    k = pl.program_id(1)

    @pl.when(k == 0)
    def _():
        acc_ref[...] = jnp.zeros_like(acc_ref)

    # ---- shakeout weight rewrite with a single softsign (once per weight
    # element for the whole forward — no batch axis in the grid).
    w = w_ref[...]
    s = w / (1.0 + jnp.abs(w))                       # softsign(w)
    w_new = itau * w + c * s + ms_coef * (m_ref[...] * s)

    # ---- x @ W'^T with the transpose folded into the MXU feed.
    acc_ref[...] += lax.dot_general(
        x_ref[...], w_new,
        dimension_numbers=(((1,), (1,)), ((), ())),
        preferred_element_type=jnp.float32)

    @pl.when(k == pl.num_programs(1) - 1)
    def _():
        o_ref[...] = (acc_ref[...] + b_ref[...]).astype(o_ref.dtype)


def shakeout_linear(x, w, b, mask, *, tau=0.5, c=0.1,
                    bn=256, bk=512,
                    vmem_budget_bytes=40 * 1024 * 1024,
                    max_batch_rows=4096):
    """Shakeout-transformed nn.Linear forward.

    x: (B, IN) f32, w: (OUT, IN) f32, b: (OUT,) f32,
    mask: (OUT, IN) {0,1} keep-mask (the Bernoulli draw `rand > tau`).
    Returns y: (B, OUT) f32.
    """
    B, IN = x.shape
    OUT, IN2 = w.shape
    assert IN == IN2 and b.shape == (OUT,) and mask.shape == (OUT, IN)
    mask = mask.astype(jnp.float32)

    # Very large batches: process in chunks with the SAME mask (identical
    # semantics; the weight rewrite is still amortized over each big chunk).
    if B > max_batch_rows:
        parts = [shakeout_linear(x[s:s + max_batch_rows], w, b, mask,
                                 tau=tau, c=c, bn=bn, bk=bk,
                                 vmem_budget_bytes=vmem_budget_bytes,
                                 max_batch_rows=max_batch_rows)
                 for s in range(0, B, max_batch_rows)]
        return jnp.concatenate(parts, axis=0)

    OUT_r = _round_up(OUT, 128)
    # Keep >= 2 OUT blocks whenever possible so the "parallel" OUT axis can be
    # split across the two v7x TensorCores (harmless on single-TC v5e/v6e).
    if OUT_r >= 256:
        bn = min(bn, OUT_r // 2)
    bn = _pick_tile(OUT, bn)
    bk = _pick_tile(IN, bk)

    Bp = _round_up(B, 8)

    def vmem_bytes(bn_, bk_):
        return 4 * (2 * Bp * bk_        # x slab (double-buffered)
                    + 4 * bn_ * bk_     # W + mask tiles (double-buffered)
                    + 2 * Bp * bn_      # output tile (double-buffered)
                    + Bp * bn_          # f32 accumulator scratch
                    + 2 * bn_)          # bias

    # Shrink tiles until the estimate fits the v7x-safe VMEM budget.
    while vmem_bytes(bn, bk) > vmem_budget_bytes and bk > 128:
        bk = _pick_tile(IN, bk - 128)
    while vmem_bytes(bn, bk) > vmem_budget_bytes and bn > 128:
        bn = _pick_tile(OUT, bn - 128)

    OUTp, INp = _round_up(OUT, 128), _round_up(IN, 128)
    assert OUTp % bn == 0 and INp % bk == 0

    # Zero-padding only when dims are unaligned (zero weights/mask rewrite to
    # exactly zero, so padding never changes the sliced result).
    xp = x if (Bp, INp) == (B, IN) else jnp.pad(x, ((0, Bp - B), (0, INp - IN)))
    wp = w if (OUTp, INp) == (OUT, IN) else jnp.pad(w, ((0, OUTp - OUT), (0, INp - IN)))
    mp = mask if (OUTp, INp) == (OUT, IN) else jnp.pad(mask, ((0, OUTp - OUT), (0, INp - IN)))
    bp = (b if OUTp == OUT else jnp.pad(b, (0, OUTp - OUT))).reshape(1, OUTp)

    grid = (OUTp // bn, INp // bk)

    kernel = functools.partial(
        _shakeout_matmul_kernel,
        itau=1.0 / (1.0 - tau),
        c=c,
        ms_coef=c * (tau / (1.0 - tau) - 1.0))

    out = pl.pallas_call(
        kernel,
        out_shape=jax.ShapeDtypeStruct((Bp, OUTp), jnp.float32),
        grid_spec=pltpu.PrefetchScalarGridSpec(
            num_scalar_prefetch=0,
            grid=grid,
            in_specs=[
                pl.BlockSpec((Bp, bk), lambda j, k: (0, k)),   # x: full-batch slab
                pl.BlockSpec((bn, bk), lambda j, k: (j, k)),   # W tile
                pl.BlockSpec((bn, bk), lambda j, k: (j, k)),   # mask tile
                pl.BlockSpec((1, bn), lambda j, k: (0, j)),    # bias
            ],
            out_specs=pl.BlockSpec((Bp, bn), lambda j, k: (0, j)),
            scratch_shapes=[pltpu.VMEM((Bp, bn), jnp.float32)],
        ),
        compiler_params=pltpu.CompilerParams(
            dimension_semantics=("parallel", "arbitrary"),
            vmem_limit_bytes=48 * 1024 * 1024),
    )(xp, wp, mp, bp)

    return out[:B, :OUT]


def shakeout_linear_ref(x, w, b, mask, *, tau=0.5, c=0.1):
    """Pure-JAX reference, written exactly like the PyTorch module."""
    itau = 1.0 / (1.0 - tau)
    softsign = lambda z: z / (1.0 + jnp.abs(z))
    mask_sign = softsign(w * mask)
    imask_sign = softsign(w * (1.0 - mask))
    w_new = c * imask_sign + itau * (w + c * tau * mask_sign)
    return jnp.dot(x, w_new.T, precision=lax.Precision.HIGHEST) + b


if __name__ == "__main__":
    B, IN, OUT = 16, 256, 256            # small, tile-friendly wrapped Linear

    key = jax.random.PRNGKey(0)
    kx, kw, kb, km = jax.random.split(key, 4)
    x = jax.random.normal(kx, (B, IN), dtype=jnp.float32)
    bound = 1.0 / (IN ** 0.5)            # nn.Linear-style init
    w = jax.random.uniform(kw, (OUT, IN), jnp.float32, minval=-bound, maxval=bound)
    b = jax.random.uniform(kb, (OUT,), jnp.float32, minval=-bound, maxval=bound)

    # (tau=0.5, c=0.1) are the module defaults; the second config exercises a
    # tau where the mask term has a nonzero coefficient (at tau=0.5 it cancels).
    for tau, c in [(0.5, 0.1), (0.25, 0.2)]:
        # Bernoulli keep-mask, exactly `rand > tau` as in the module.
        # TODO(synk): torch.rand's host RNG stream cannot be reproduced in JAX;
        # the mask here comes from jax.random with the same distribution.
        mask = (jax.random.uniform(km, (OUT, IN), jnp.float32) > tau).astype(jnp.float32)

        y = shakeout_linear(x, w, b, mask, tau=tau, c=c)
        jax.block_until_ready(y)

        y_ref = shakeout_linear_ref(x, w, b, mask, tau=tau, c=c)
        assert y.shape == (B, OUT)
        assert jnp.allclose(y, y_ref, atol=1e-3, rtol=1e-3), \
            f"mismatch vs reference (tau={tau}, c={c})"
        assert bool(jnp.all(jnp.isfinite(y)))

        keep_rate = float(jnp.mean(mask))            # Bernoulli(1 - tau) sanity
        assert abs(keep_rate - (1.0 - tau)) < 0.1, f"suspicious keep rate {keep_rate}"

    # TODO(synk): the PyTorch module mutates layer.weight.data in place every
    # forward (weights drift across calls); here the transform is applied
    # functionally per call, which matches a single forward pass.

    print("KERNEL_OK")
</pallas_src>

<mosaic_0001>
module attributes {stable_mosaic.version = 11 : i64} {
  func.func @_shakeout_matmul_kernel(%arg0: i32, %arg1: i32, %arg2: memref<16x256xf32, #tpu.memory_space<vmem>>, %arg3: memref<128x256xf32, #tpu.memory_space<vmem>>, %arg4: memref<128x256xf32, #tpu.memory_space<vmem>>, %arg5: memref<1x128xf32, #tpu.memory_space<vmem>>, %arg6: memref<16x128xf32, #tpu.memory_space<vmem>>, %arg7: memref<16x128xf32, #tpu.memory_space<vmem>>) attributes {dimension_semantics = [#tpu.dimension_semantics<parallel>, #tpu.dimension_semantics<arbitrary>], iteration_bounds = array<i64: 2, 1>, scalar_prefetch = 0 : i64, scratch_operands = 1 : i64, tpu.core_type = #tpu.core_type<tc>, window_params = [{transform_indices = @transform_0, window_bounds = array<i64: 16, 256>}, {transform_indices = @transform_1, window_bounds = array<i64: 128, 256>}, {transform_indices = @transform_2, window_bounds = array<i64: 128, 256>}, {transform_indices = @transform_3, window_bounds = array<i64: 1, 128>}, {transform_indices = @transform_4, window_bounds = array<i64: 16, 128>}]} {
    %c0_i32 = arith.constant 0 : i32
    %0 = arith.cmpi eq, %arg1, %c0_i32 : i32
    %1 = arith.extui %0 : i1 to i32
    %c0_i32_0 = arith.constant 0 : i32
    %2 = arith.cmpi ne, %1, %c0_i32_0 : i32
    scf.if %2 {
      %cst_16 = arith.constant 0.000000e+00 : f32
      %26 = vector.broadcast %cst_16 : f32 to vector<16x128xf32>
      %c0_17 = arith.constant 0 : index
      %c0_18 = arith.constant 0 : index
      %27 = vector.load %arg7[%c0_17, %c0_18] : memref<16x128xf32, #tpu.memory_space<vmem>>, vector<16x128xf32>
      tpu.vector_store %arg7[%c0_17, %c0_18], %26 {strides = array<i32>} : memref<16x128xf32, #tpu.memory_space<vmem>>, vector<16x128xf32>,
    } else {
    }
    %c0 = arith.constant 0 : index
    %c0_1 = arith.constant 0 : index
    %3 = vector.load %arg3[%c0, %c0_1] : memref<128x256xf32, #tpu.memory_space<vmem>>, vector<128x256xf32>
    %4 = math.absf %3 : vector<128x256xf32>
    %cst = arith.constant 1.000000e+00 : f32
    %5 = vector.broadcast %cst : f32 to vector<128x256xf32>
    %6 = arith.addf %5, %4 : vector<128x256xf32>
    %7 = arith.divf %3, %6 : vector<128x256xf32>
    %cst_2 = arith.constant 2.000000e+00 : f32
    %8 = vector.broadcast %cst_2 : f32 to vector<128x256xf32>
    %9 = arith.mulf %8, %3 : vector<128x256xf32>
    %cst_3 = arith.constant 1.000000e-01 : f32
    %10 = vector.broadcast %cst_3 : f32 to vector<128x256xf32>
    %11 = arith.mulf %10, %7 : vector<128x256xf32>
    %12 = arith.addf %9, %11 : vector<128x256xf32>
    %c0_4 = arith.constant 0 : index
    %c0_5 = arith.constant 0 : index
    %13 = vector.load %arg4[%c0_4, %c0_5] : memref<128x256xf32, #tpu.memory_space<vmem>>, vector<128x256xf32>
    %14 = arith.mulf %13, %7 : vector<128x256xf32>
    %cst_6 = arith.constant 0.000000e+00 : f32
    %15 = vector.broadcast %cst_6 : f32 to vector<128x256xf32>
    %16 = arith.mulf %15, %14 : vector<128x256xf32>
    %17 = arith.addf %12, %16 : vector<128x256xf32>
    %c0_7 = arith.constant 0 : index
    %c0_8 = arith.constant 0 : index
    %18 = vector.load %arg7[%c0_7, %c0_8] : memref<16x128xf32, #tpu.memory_space<vmem>>, vector<16x128xf32>
    %c0_9 = arith.constant 0 : index
    %c0_10 = arith.constant 0 : index
    %19 = vector.load %arg2[%c0_9, %c0_10] : memref<16x256xf32, #tpu.memory_space<vmem>>, vector<16x256xf32>
    %cst_11 = arith.constant dense<0.000000e+00> : vector<16x128xf32>
    %20 = tpu.matmul %19, %17, %cst_11 {dimension_numbers = #tpu.dot_dimension_numbers<[1], [1], [0], [0], [0, 0, 1, 0], [], []>} : vector<16x256xf32>, vector<128x256xf32>, vector<16x128xf32> -> vector<16x128xf32>
    %21 = arith.addf %18, %20 : vector<16x128xf32>
    %c0_12 = arith.constant 0 : index
    %c0_13 = arith.constant 0 : index
    %22 = vector.load %arg7[%c0_12, %c0_13] : memref<16x128xf32, #tpu.memory_space<vmem>>, vector<16x128xf32>
    tpu.vector_store %arg7[%c0_12, %c0_13], %21 {strides = array<i32>} : memref<16x128xf32, #tpu.memory_space<vmem>>, vector<16x128xf32>,
    %c0_i32_14 = arith.constant 0 : i32
    %23 = arith.cmpi eq, %arg1, %c0_i32_14 : i32
    %24 = arith.extui %23 : i1 to i32
    %c0_i32_15 = arith.constant 0 : i32
    %25 = arith.cmpi ne, %24, %c0_i32_15 : i32
    scf.if %25 {
      %c0_16 = arith.constant 0 : index
      %c0_17 = arith.constant 0 : index
      %26 = vector.load %arg7[%c0_16, %c0_17] : memref<16x128xf32, #tpu.memory_space<vmem>>, vector<16x128xf32>
      %c0_18 = arith.constant 0 : index
      %c0_19 = arith.constant 0 : index
      %27 = vector.load %arg5[%c0_18, %c0_19] : memref<1x128xf32, #tpu.memory_space<vmem>>, vector<1x128xf32>
      %28 = vector.broadcast %27 : vector<1x128xf32> to vector<16x128xf32>
      %29 = arith.addf %26, %28 : vector<16x128xf32>
      %c0_20 = arith.constant 0 : index
      %c0_21 = arith.constant 0 : index
      %30 = vector.load %arg6[%c0_20, %c0_21] : memref<16x128xf32, #tpu.memory_space<vmem>>, vector<16x128xf32>
      tpu.vector_store %arg6[%c0_20, %c0_21], %29 {strides = array<i32>} : memref<16x128xf32, #tpu.memory_space<vmem>>, vector<16x128xf32>,
    } else {
    }
    return
  }
  func.func @transform_0(%arg0: i32, %arg1: i32) -> (i32, i32) {
    %c0_i32 = arith.constant 0 : i32
    %c0_i32_0 = arith.constant 0 : i32
    return %c0_i32, %arg1 : i32, i32
  }
  func.func @transform_1(%arg0: i32, %arg1: i32) -> (i32, i32) {
    %c0_i32 = arith.constant 0 : i32
    return %arg0, %arg1 : i32, i32
  }
  func.func @transform_2(%arg0: i32, %arg1: i32) -> (i32, i32) {
    %c0_i32 = arith.constant 0 : i32
    return %arg0, %arg1 : i32, i32
  }
  func.func @transform_3(%arg0: i32, %arg1: i32) -> (i32, i32) {
    %c0_i32 = arith.constant 0 : i32
    %c0_i32_0 = arith.constant 0 : i32
    return %c0_i32, %arg0 : i32, i32
  }
  func.func @transform_4(%arg0: i32, %arg1: i32) -> (i32, i32) {
    %c0_i32 = arith.constant 0 : i32
    %c0_i32_0 = arith.constant 0 : i32
    return %c0_i32, %arg0 : i32, i32
  }
}

</mosaic_0001>

<bundles_post_ra>
// kernel: tpu_custom_call.1
= control target key start
LH: loop header
LB: loop body
LE: loop exit
PB: predicated region body
PF: predicated region fallthrough
CT: control target
= control target key end

     0   :  { %9 = vsyncpa [#allocation4], 0  ;;  %s2863_s0 = inlined_call_operand.hbm [shape: f32[16,256], index: 0, kind: input, shape index: {}]   ;;  %s2864_s1 = inlined_call_operand.hbm [shape: f32[256,256], index: 1, kind: input, shape index: {}]   ;;  %s2865_s2 = inlined_call_operand.hbm [shape: f32[256,256], index: 2, kind: input, shape index: {}]   ;;  %s2866_s3 = inlined_call_operand.vmem [shape: f32[1,256], index: 3, kind: input, shape index: {}]   ;;  %s2867_s4 = inlined_call_operand.hbm [shape: f32[16,256], index: 4, kind: output, shape index: {}]  }
   0x1   :  { %10 = vsyncpa [#allocation7], 0 }
   0x2   :  { %12 = vsyncpa [#allocation7 + $0x1], 0 }
   0x3   :  { %13 = vsyncpa [#allocation5], 0 }
   0x4   :  { %15 = vsyncpa [#allocation5 + $0x1], 0  ;;  %s1758_s15 = smov 0   ;;  %s1760_s16 = smov 0  }
   0x5   :  { %s1762_s17 = smov 0   ;;  %s1764_s18 = smov 0  }
   0x6   :  { %s1766_s19 = smov 0   ;;  %s1768_s20 = smov 0  }
   0x7 LB: > { %s33_s21 = sadd.s32 1, %s1721_s19  ;;  %s68_s22 = sadd.s32 1, %s1713_s17  ;;  %s1725_s20 = sphi %s1768_s20, %s21_s20   ;;  %s1721_s19 = sphi %s1766_s19, %s2991_s19   ;;  %s1717_s18 = sphi %s1764_s18, %s2990_s18   ;;  %s1713_s17 = sphi %s1762_s17, %s2989_s17   ;;  %s1709_s16 = sphi %s1760_s16, %s2988_s16   ;;  %s1705_s15 = sphi %s1758_s15, %s2987_s15  }
   0x8   : > { %p35_p0 = scmp.ge.s32.totalorder %s33_s21, 2  ;;  %p75_p1 = scmp.ne.s32.totalorder %s1713_s17, %s1709_s16 }
   0x9   : > { %p76_p2 = scmp.eq.s32.totalorder %s1725_s20, 0  ;;  %p1347_p4 = scmp.ge.s32.totalorder %s1725_s20, 2 }
   0xa   : > { %s2993_s21 = smov (%p35_p0, %s33_s21), 0  ;;  %p1427_p6 = scmp.lt.s32.totalorder %s1725_s20, 2 }
   0xb   : > { %p1798_p3 = por %p76_p2, %p75_p1  ;;  %s63_s24 = ssub.s32 %s1721_s19, %s2993_s21 }
   0xc   : > { %p66_p5 = scmp.eq.s32.totalorder %s63_s24, 0  ;;  %s202_s25 = sand.u32 1, %s1725_s20  }
   0xd   : > { %s204_s26 = sand.u32 1, %s1713_s17   ;;  %s1366_s29 = sshll.u32 %s1721_s19, 8 }
   0xe   : > { %s1809_s27 = scalar_select %p66_p5, %s1713_s17, %s68_s22  }
   0xf   : > { %s1348_s28 = sshll.u32 %s204_s26, 8  ;;  %s214_s6 = scalar_lea.hbm %s2864_s1, %s1366_s29 }
  0x10   : > { %s206_s7 = scalar_lea.vmem [#allocation6], %s1348_s28  ;;  %s215_s9 = sshll.u32 %s214_s6, 4  ;;  %s216_s9 = int_to_ptr.hbm [resolvable:$true] %s215_s9 }
  0x11   : > { %s217_s8 = sshll.u32 %s206_s7, 4  ;;  %p1817_p7 = pnand %p1427_p6, %p1798_p3  ;;  %s218_s8 = int_to_ptr.vmem [resolvable:$true] %s217_s8 }
  0x12   : > { %s239_s13 = scalar_lea.hbm %s2865_s2, %s1366_s29  ;;  %s1824_s14 = scalar_lea.sflag [#allocation7], %s202_s25 }
  0x13   : > { %s1727_s22 = smov 256   ;;  %s1728_s24 = smov 16  }
  0x14   : > { %1418 = dma.hbm_to_vmem [thread:$0]  (!%p1817_p7), %s216_s9, 4096, %s218_s8, %s1824_s14, %s1727_s22, %s1727_s22, %s1728_s24  }
  0x15   : > { %s240_s23 = sshll.u32 %s239_s13, 4  ;;  %s231_s26 = scalar_lea.vmem [#allocation8], %s1348_s28  ;;  %s241_s23 = int_to_ptr.hbm [resolvable:$true] %s240_s23 }
  0x16   : > { %s242_s30 = sshll.u32 %s231_s26, 4  ;;  %s1833_s5 = sadd.s32 4294967295, %s1725_s20   ;;  %s243_s30 = int_to_ptr.vmem [resolvable:$true] %s242_s30 }
  0x17   : > { %s1344_s29 = sadd.s32 4294967294, %s1725_s20   ;;  %p81_p8 = scmp.ne.s32.totalorder %s1709_s16, %s1705_s15 }
  0x18   : > { %p82_p9 = scmp.eq.s32.totalorder %s1833_s5, 0  ;;  %p159_p10 = scmp.eq.s32.totalorder %s1833_s5, 1 }
  0x19   : > { %p165_p11 = scmp.eq.s32.totalorder %s1344_s29, 1  ;;  %p1345_p12 = scmp.ge.s32.totalorder %s1725_s20, 1 }
  0x1a   : > { %p1843_p13 = por %p82_p9, %p81_p8  ;;  %p1850_p0 = por %p159_p10, %p75_p1 }
  0x1b   : > { %p1854_p2 = por %p165_p11, %p81_p8  ;;  %p172_p3 = scmp.lt.s32.totalorder %s1725_s20, 3 }
  0x1c   : > { %s186_s9 = sshll.u32 %s2863_s0, 4  ;;  %s1729_s11 = smov [#allocation3]   ;;  %s187_s9 = int_to_ptr.hbm [resolvable:$true] %s186_s9 }
  0x1d   : > { %p173_p5 = pnand %p1345_p12, %p172_p3  ;;  %s188_s12 = sshll.u32 %s1729_s11, 4  ;;  %s189_s12 = int_to_ptr.vmem [resolvable:$true] %s188_s12 }
  0x1e   : > { %1421 = dma.hbm_to_vmem [thread:$0]  (!%p1817_p7), %s241_s23, 4096, %s243_s30, %s1824_s14, %s1727_s22, %s1727_s22, %s1728_s24  }
  0x1f   : > { %p1411_p6 = pneg %p173_p5  ;;  %260 = sbr.rel (%p173_p5) target bundleno = 372 (0x174), region = 36 }
  0x21   : > { %p1412_p1 = pnand %p1411_p6, %p82_p9 }
  0x23   : > { %1414 = dma.hbm_to_vmem [thread:$0]  (!%p1412_p1), %s187_s9, 512, %s189_s12, [#allocation4], %s1727_s22, %s1727_s22, %s1728_s24  }
  0x24   : > { %1692 = dma.done.wait (%p82_p9), [#allocation4], 512  }
  0x25   : > { %1694 = vsyncadd (%p82_p9), [#allocation4], 4294966784  ;;  %s267_s13 = sand.u32 1, %s1833_s5   ;;  %s1879_s10 = sand.u32 1, %s1709_s16  }
  0x26   : > { %s1358_s14 = sshll.u32 %s1879_s10, 8  ;;  %s268_s23 = scalar_lea.sflag [#allocation7], %s267_s13 }
  0x27   : > { %s1884_s26 = scalar_lea.vmem [#allocation6], %s1358_s14 }
  0x28   : > { %1696 = dma.done.wait (%p1843_p13), %s268_s23, 8192  }
  0x29   : > { %1698 = vsyncadd (%p1843_p13), %s268_s23, 4294959104  ;;  %v1891_v0 = vld [vmem:[%s1884_s26 + $0xf0] sm:$0xff]  ;;  %v1894_v1 = vld [vmem:[%s1884_s26 + $0xf8] sm:$0xff]  ;;  %s2008_s22 = scalar_lea.vmem [#allocation8], %s1358_s14  ;;  %p320_p7 = scmp.lt.s32.totalorder %s1717_s18, 1 }
  0x2a   : > { %v391_v2 = vand.u32 2147483647, %v1891_v0  ;;  %v392_v3 = vand.u32 2147483647, %v1894_v1  ;;  %v1899_v4 = vld [vmem:[%s1884_s26 + $0xe0] sm:$0xff]  ;;  %v1905_v8 = vld [vmem:[%s1884_s26 + $0xe8] sm:$0xff] }
  0x2b   : > { %v389_v7 = vand.u32 2147483647, %v1899_v4  ;;  %v390_v9 = vand.u32 2147483647, %v1905_v8  ;;  %v1909_v10 = vld [vmem:[%s1884_s26 + $0xd0] sm:$0xff]  ;;  %v1913_v13 = vmul.f32 2.0, %v1891_v0 }
  0x2c   : > { %v423_v5 = vadd.f32 1.0, %v391_v2  ;;  %v1901_v6 = vadd.f32 1.0, %v392_v3  ;;  %v1922_v18 = vmul.f32 2.0, %v1894_v1  ;;  %v1925_v19 = vmul.f32 2.0, %v1899_v4  ;;  %v1929_v21 = vld [vmem:[%s1884_s26 + $0xd8] sm:$0xff]  ;;  %v1964_v41 = vld [vmem:[%s1884_s26 + $0xc0] sm:$0xff] }
  0x2d   : > { %v1916_v15 = vadd.f32 1.0, %v389_v7  ;;  %v1918_v16 = vadd.f32 1.0, %v390_v9  ;;  %v387_v20 = vand.u32 2147483647, %v1909_v10  ;;  %v1934_v22 = vmul.f32 2.0, %v1905_v8  ;;  %v1967_v42 = vld [vmem:[%s1884_s26 + $0xc8] sm:$0xff] }
  0x2e   : > { %1485 = vrcp.f32 %v423_v5  ;;  %v884_v11 = vand.u32 2147483647, %v423_v5  ;;  %v886_v12 = vand.u32 2147483648, %v423_v5  ;;  %v899_v14 = vand.u32 2147483647, %v1901_v6  ;;  %v1030_v53 = vld [vmem:[%s2008_s22 + $0xe8] sm:$0xff] }
  0x2f   : > { %1487 = vrcp.f32 %v1901_v6  ;;  %v901_v17 = vand.u32 2147483648, %v1901_v6  ;;  %vm880_vm0 = vweird.f32 %v423_v5  ;;  %vm895_vm1 = vweird.f32 %v1901_v6  ;;  %s321_s24 = scalar_select %p320_p7, %s1717_s18, 1 }
  0x30   : > { %1489 = vrcp.f32 %v1916_v15  ;;  %vm1936_vm2 = vcmp.eq.f32.partialorder %v884_v11, 8.507059e+37  ;;  %v887_v24 = vor.u32 1.1754944e-38, %v886_v12  ;;  %v854_v25 = vand.u32 2147483647, %v1916_v15  ;;  %v1031_v12 = vld [vmem:[%s2008_s22 + $0xf0] sm:$0xff]  ;;  %s1360_s25 = sshll.u32 %s1879_s10, 4 }
  0x31   : > { %v856_v26 = vand.u32 2147483648, %v1916_v15  ;;  %1491 = vrcp.f32 %v1918_v16  ;;  %vm1943_vm3 = vcmp.eq.f32.partialorder %v899_v14, 8.507059e+37  ;;  %v869_v29 = vand.u32 2147483647, %v1918_v16  ;;  %s322_s29 = scalar_lea.vmem %s2866_s3, %s321_s24  ;;  %s1362_s7 = sshll.u32 %s1717_s18, 3 }
  0x32   : > { %v1948_v30 = vadd.f32 1.0, %v387_v20  ;;  %v388_v31 = vand.u32 2147483647, %v1929_v21  ;;  %v902_v34 = vor.u32 1.1754944e-38, %v901_v17  ;;  %v871_v35 = vand.u32 2147483648, %v1918_v16  ;;  %s1209_s11 = scalar_lea.hbm %s2867_s4, %s1362_s7  ;;  %s314_s12 = scalar_lea.vmem [#allocation9], %s1360_s25 }
  0x33   : > { %v1953_v36 = vmul.f32 2.0, %v1909_v10  ;;  %vm850_vm4 = vweird.f32 %v1916_v15  ;;  %vm865_vm5 = vweird.f32 %v1918_v16  ;;  %vm1959_vm8 = vcmp.eq.f32.partialorder %v854_v25, 8.507059e+37  ;;  %s1210_s13 = sshll.u32 %s314_s12, 4  ;;  %s1212_s14 = sshll.u32 %s1209_s11, 4  ;;  %s1211_s13 = int_to_ptr.vmem [resolvable:$true] %s1210_s13  ;;  %s1213_s14 = int_to_ptr.hbm [resolvable:$true] %s1212_s14 }
  0x34   : > { %v1486_v27 = vpop.eup %1485  ;;  %1493 = vrcp.f32 %v1948_v30  ;;  %v857_v40 = vor.u32 1.1754944e-38, %v856_v26  ;;  %vm1969_vm9 = vcmp.eq.f32.partialorder %v869_v29, 8.507059e+37  ;;  %v824_v46 = vand.u32 2147483647, %v1948_v30  ;;  %v1032_v26 = vld [vmem:[%s2008_s22 + $0xf8] sm:$0xff]  ;;  %s1199_s18 = scalar_lea.sflag [#allocation5], %s1879_s10 }
  0x35   : > { %v1488_v32 = vpop.eup %1487  ;;  %v876_v33 = vmul.f32 %v1486_v27, %v423_v5  ;;  %vm881_vm6 = vweird.f32 %v1486_v27  ;;  %v826_v47 = vand.u32 2147483648, %v1948_v30  ;;  %v1975_v48 = vadd.f32 1.0, %v388_v31  ;;  %s1653_s23 = sshra.s32 %s1213_s14, 4  ;;  %s1659_s30 = scalar_lea.hbm %s2867_s4, 32  ;;  %s1654_s23 = int_to_ptr.hbm [resolvable:$true] %s1653_s23 }
  0x36   : > { %v891_v37 = vmul.f32 %v1488_v32, %v1901_v6  ;;  %vm896_vm7 = vweird.f32 %v1488_v32  ;;  %v1490_v43 = vpop.eup %1489  ;;  %v872_v52 = vor.u32 1.1754944e-38, %v871_v35  ;;  %vm820_vm10 = vweird.f32 %v1948_v30  ;;  %vm1981_vm11 = vmor %vm880_vm0, %vm881_vm6  ;;  %p1660_p11 = scmp.lt.s32.totalorder %s1654_s23, %s2867_s4 }
  0x37   : > { %v877_v38 = vsub.f32 1.0, %v876_v33  ;;  %v1492_v49 = vpop.eup %1491  ;;  %v846_v51 = vmul.f32 %v1490_v43, %v1916_v15  ;;  %v385_v56 = vand.u32 2147483647, %v1964_v41  ;;  %v386_v57 = vand.u32 2147483647, %v1967_v42  ;;  %vm1991_vm12 = vmor %vm895_vm1, %vm896_vm7 }
  0x38   : > { %v892_v44 = vsub.f32 1.0, %v891_v37  ;;  %v861_v55 = vmul.f32 %v1492_v49, %v1918_v16  ;;  %vm851_vm13 = vweird.f32 %v1490_v43  ;;  %vm866_vm14 = vweird.f32 %v1492_v49 }
  0x39   : > { %v878_v50 = vmul.f32 %v1486_v27, %v877_v38  ;;  %v847_v60 = vsub.f32 1.0, %v846_v51  ;;  %vm1995_vm15 = vcmp.eq.f32.partialorder %v824_v46, 8.507059e+37  ;;  %v827_v3 = vor.u32 1.1754944e-38, %v826_v47  ;;  %vm2016_vm0 = vmor %vm850_vm4, %vm851_vm13  ;;  %v1029_v46 = vld [vmem:[%s2008_s22 + $0xe0] sm:$0xff] }
  0x3a   : > { %v893_v54 = vmul.f32 %v1488_v32, %v892_v44  ;;  %v1494_v61 = vpop.eup %1493  ;;  %v862_v63 = vsub.f32 1.0, %v861_v55  ;;  %1495 = vrcp.f32 %v1975_v48  ;;  %v839_v9 = vand.u32 2147483647, %v1975_v48  ;;  %vm2028_vm1 = vmor %vm865_vm5, %vm866_vm14 }
  0x3b   : > { %v879_v58 = vadd.f32 %v1486_v27, %v878_v50  ;;  %v848_v6 = vmul.f32 %v1490_v43, %v847_v60  ;;  %v816_v7 = vmul.f32 %v1494_v61, %v1948_v30  ;;  %v841_v23 = vand.u32 2147483648, %v1975_v48 }
  0x3c   : > { %v894_v62 = vadd.f32 %v1488_v32, %v893_v54  ;;  %v863_v20 = vmul.f32 %v1492_v49, %v862_v63  ;;  %vm821_vm4 = vweird.f32 %v1494_v61  ;;  %vm840_vm7 = vcmp.eq.f32.partialorder %v839_v9, 8.507059e+37 }
  0x3d   : > { %v883_v5 = vsel %vm1981_vm11, %v1486_v27, %v879_v58  ;;  %v849_v27 = vadd.f32 %v1490_v43, %v848_v6  ;;  %v817_v29 = vsub.f32 1.0, %v816_v7  ;;  %v2084_v17 = vadd.f32 1.0, %v386_v57 }
  0x3e   : > { %v888_v11 = vsel %vm1936_vm2, %v887_v24, %v883_v5  ;;  %v898_v14 = vsel %vm1991_vm12, %v1488_v32, %v894_v62  ;;  %vm835_vm2 = vweird.f32 %v1975_v48  ;;  %v864_v32 = vadd.f32 %v1492_v49, %v863_v20  ;;  %v1027_v62 = vld [vmem:[%s2008_s22 + $0xd0] sm:$0xff] }
  0x3f   : > { %v889_v24 = vmul.f32 %v888_v11, %v1891_v0  ;;  %v903_v25 = vsel %vm1943_vm3, %v902_v34, %v898_v14  ;;  %v2034_v0 = vadd.f32 1.0, %v385_v56  ;;  %v853_v16 = vsel %vm2016_vm0, %v1490_v43, %v849_v27  ;;  %vm2053_vm3 = vmor %vm820_vm10, %vm821_vm4 }
  0x40   : > { %v904_v31 = vmul.f32 %v903_v25, %v1894_v1  ;;  %v818_v34 = vmul.f32 %v1494_v61, %v817_v29  ;;  %v2038_v35 = vpop.eup %1495  ;;  %v858_v44 = vsel %vm1959_vm8, %v857_v40, %v853_v16  ;;  %v868_v1 = vsel %vm2028_vm1, %v1492_v49, %v864_v32  ;;  %v2091_v25 = vld [vmem:[%s1884_s26 + $0xb8] sm:$0xff] }
  0x41   : > { %v967_v28 = vmul.f32 0.1, %v889_v24  ;;  %v1063_v33 = vmul.f32 %v1031_v12, %v889_v24  ;;  %v859_v51 = vmul.f32 %v858_v44, %v1899_v4  ;;  %v873_v43 = vsel %vm1969_vm9, %v872_v52, %v868_v1 }
  0x42   : > { %v968_v37 = vmul.f32 0.1, %v904_v31  ;;  %v1064_v38 = vmul.f32 %v1032_v26, %v904_v31  ;;  %v819_v49 = vadd.f32 %v1494_v61, %v818_v34  ;;  %v831_v45 = vmul.f32 %v2038_v35, %v1975_v48 }
  0x43   : > { %v999_v47 = vadd.f32 %v967_v28, %v1913_v13  ;;  %v1095_v50 = vmul.f32 0.0, %v1063_v33  ;;  %v874_v13 = vmul.f32 %v873_v43, %v1905_v8  ;;  %v965_v4 = vmul.f32 0.1, %v859_v51 }
  0x44   : > { %v1000_v39 = vadd.f32 %v968_v37, %v1922_v18  ;;  %v1096_v40 = vmul.f32 0.0, %v1064_v38  ;;  %v1061_v56 = vmul.f32 %v1029_v46, %v859_v51  ;;  %v823_v59 = vsel %vm2053_vm3, %v1494_v61, %v819_v49 }
  0x45   : > { %v1127_v55 = vadd.f32 %v1095_v50, %v999_v47  ;;  %v966_v58 = vmul.f32 0.1, %v874_v13  ;;  %v1062_v30 = vmul.f32 %v1030_v53, %v874_v13  ;;  %v997_v18 = vadd.f32 %v965_v4, %v1925_v19 }
  0x46   : > { %v1128_v52 = vadd.f32 %v1096_v40, %v1000_v39  ;;  %v1093_v60 = vmul.f32 0.0, %v1061_v56  ;;  %v828_v8 = vsel %vm1995_vm15, %v827_v3, %v823_v59  ;;  %v832_v63 = vsub.f32 1.0, %v831_v45  ;;  %v1023_v56 = vld [vmem:[%s2008_s22 + $0xb0] sm:$0xff] }
  0x47   : > { %1369 = vmatpush.xpose.msra.mxu2 %v1127_v55  ;;  %1135 = vmatpush.xpose.msra.mxu0 %v1127_v55  ;;  %v998_v5 = vadd.f32 %v966_v58, %v1934_v22  ;;  %v1094_v6 = vmul.f32 0.0, %v1062_v30  ;;  %v829_v7 = vmul.f32 %v828_v8, %v1909_v10  ;;  %vm836_vm5 = vweird.f32 %v2038_v35  ;;  %v2136_v55 = vld [vmem:[%s1884_s26 + $0xa8] sm:$0xff] }
  0x48   : > { %1385 = vmatpush.xpose.msra.mxu3 %v1128_v52  ;;  %1158 = vmatpush.xpose.msra.mxu1 %v1128_v52  ;;  %v1125_v61 = vadd.f32 %v1093_v60, %v997_v18  ;;  %v833_v11 = vmul.f32 %v2038_v35, %v832_v63  ;;  %1497 = vrcp.f32 %v2034_v0  ;;  %vm2074_vm6 = vmor %vm835_vm2, %vm836_vm5  ;;  %v842_v12 = vor.u32 1.1754944e-38, %v841_v23  ;;  %v2088_v23 = vld [vmem:[%s1884_s26 + $0xb0] sm:$0xff] }
  0x49   : > { %v1126_v19 = vadd.f32 %v1094_v6, %v998_v5  ;;  %v963_v2 = vmul.f32 0.1, %v829_v7  ;;  %v1059_v3 = vmul.f32 %v1027_v62, %v829_v7  ;;  %v794_v14 = vand.u32 2147483647, %v2034_v0 }
  0x4a   : > { %v834_v10 = vadd.f32 %v2038_v35, %v833_v11  ;;  %v932_v9 = vmul.f32 2.0, %v1929_v21  ;;  %vm790_vm8 = vweird.f32 %v2034_v0  ;;  %1499 = vrcp.f32 %v2084_v17 }
  0x4b   : > { %1370 = vmatpush.xpose.msra.mxu2 %v1125_v61  ;;  %1136 = vmatpush.xpose.msra.mxu0 %v1125_v61  ;;  %v995_v20 = vadd.f32 %v963_v2, %v1953_v36  ;;  %v1091_v24 = vmul.f32 0.0, %v1059_v3  ;;  %v1028_v36 = vld [vmem:[%s2008_s22 + $0xd8] sm:$0xff]  ;;  %v796_v27 = vand.u32 2147483648, %v2034_v0  ;;  %v2102_v15 = vmul.f32 2.0, %v1964_v41  ;;  %v1025_v61 = vld [vmem:[%s2008_s22 + $0xc0] sm:$0xff] }
  0x4c   : > { %1386 = vmatpush.xpose.msra.mxu3 %v1126_v19  ;;  %1159 = vmatpush.xpose.msra.mxu1 %v1126_v19  ;;  %v838_v48 = vsel %vm2074_vm6, %v2038_v35, %v834_v10  ;;  %vm2105_vm9 = vcmp.eq.f32.partialorder %v794_v14, 8.507059e+37  ;;  %v383_v28 = vand.u32 2147483647, %v2088_v23  ;;  %v384_v33 = vand.u32 2147483647, %v2091_v25 }
  0x4d   : > { %v1123_v57 = vadd.f32 %v1091_v24, %v995_v20  ;;  %v843_v26 = vsel %vm840_vm7, %v842_v12, %v838_v48  ;;  %v809_v34 = vand.u32 2147483647, %v2084_v17  ;;  %v811_v35 = vand.u32 2147483648, %v2084_v17 }
  0x4e   : > { %v1498_v29 = vpop.eup %1497  ;;  %v844_v31 = vmul.f32 %v843_v26, %v1929_v21  ;;  %v2115_v37 = vmul.f32 2.0, %v1967_v42  ;;  %v2118_v21 = vld [vmem:[%s1884_s26 + $0xa0] sm:$0xff]  ;;  %v2120_v46 = vadd.f32 1.0, %v383_v28  ;;  %v2122_v1 = vadd.f32 1.0, %v384_v33 }
  0x4f   : > { %1371 = vmatpush.xpose.msra.mxu2 %v1123_v57  ;;  %v786_v16 = vmul.f32 %v1498_v29, %v2034_v0  ;;  %1137 = vmatpush.xpose.msra.mxu0 %v1123_v57  ;;  %vm791_vm10 = vweird.f32 %v1498_v29  ;;  %v797_v50 = vor.u32 1.1754944e-38, %v796_v27  ;;  %vm805_vm11 = vweird.f32 %v2084_v17 }
  0x50   : > { %v964_v38 = vmul.f32 0.1, %v844_v31  ;;  %v1060_v44 = vmul.f32 %v1028_v36, %v844_v31  ;;  %v1500_v51 = vpop.eup %1499  ;;  %1501 = vrcp.f32 %v2120_v46  ;;  %v381_v54 = vand.u32 2147483647, %v2118_v21  ;;  %vm2140_vm13 = vmor %vm790_vm8, %vm791_vm10  ;;  %v1026_v36 = vld [vmem:[%s2008_s22 + $0xc8] sm:$0xff] }
  0x51   : > { %v787_v47 = vsub.f32 1.0, %v786_v16  ;;  %v801_v40 = vmul.f32 %v1500_v51, %v2084_v17  ;;  %vm2128_vm12 = vcmp.eq.f32.partialorder %v809_v34, 8.507059e+37  ;;  %v2133_v49 = vmul.f32 2.0, %v2088_v23 }
  0x52   : > { %v996_v43 = vadd.f32 %v964_v38, %v932_v9  ;;  %v1092_v53 = vmul.f32 0.0, %v1060_v44  ;;  %v812_v45 = vor.u32 1.1754944e-38, %v811_v35  ;;  %v764_v52 = vand.u32 2147483647, %v2120_v46 }
  0x53   : > { %v788_v39 = vmul.f32 %v1498_v29, %v787_v47  ;;  %1503 = vrcp.f32 %v2122_v1  ;;  %v802_v30 = vsub.f32 1.0, %v801_v40  ;;  %vm806_vm14 = vweird.f32 %v1500_v51 }
  0x54   : > { %v1124_v4 = vadd.f32 %v1092_v53, %v996_v43  ;;  %v766_v59 = vand.u32 2147483648, %v2120_v46  ;;  %v779_v18 = vand.u32 2147483647, %v2122_v1  ;;  %v781_v0 = vand.u32 2147483648, %v2122_v1  ;;  %vm2164_vm0 = vmor %vm805_vm11, %vm806_vm14 }
  0x55   : > { %v789_v58 = vadd.f32 %v1498_v29, %v788_v39  ;;  %v2149_v60 = vadd.f32 1.0, %v381_v54  ;;  %v382_v8 = vand.u32 2147483647, %v2136_v55  ;;  %v803_v63 = vmul.f32 %v1500_v51, %v802_v30  ;;  %v2228_v30 = vld [vmem:[%s1884_s26 + $0x98] sm:$0xff] }
  0x56   : > { %1387 = vmatpush.xpose.msra.mxu3 %v1124_v4  ;;  %1160 = vmatpush.xpose.msra.mxu1 %v1124_v4  ;;  %vm760_vm15 = vweird.f32 %v2120_v46  ;;  %v2156_v5 = vmul.f32 2.0, %v2091_v25  ;;  %v1502_v6 = vpop.eup %1501  ;;  %vm2168_vm1 = vcmp.eq.f32.partialorder %v764_v52, 8.507059e+37  ;;  %vm775_vm2 = vweird.f32 %v2122_v1 }
  0x57   : > { %v793_v62 = vsel %vm2140_vm13, %v1498_v29, %v789_v58  ;;  %1505 = vrcp.f32 %v2149_v60  ;;  %v804_v3 = vadd.f32 %v1500_v51, %v803_v63  ;;  %v756_v22 = vmul.f32 %v1502_v6, %v2120_v46 }
  0x58   : > { %v798_v7 = vsel %vm2105_vm9, %v797_v50, %v793_v62  ;;  %v767_v12 = vor.u32 1.1754944e-38, %v766_v59  ;;  %vm761_vm4 = vweird.f32 %v1502_v6  ;;  %vm2176_vm3 = vcmp.eq.f32.partialorder %v779_v18, 8.507059e+37 }
  0x59   : > { %v799_v2 = vmul.f32 %v798_v7, %v1964_v41  ;;  %v1504_v10 = vpop.eup %1503  ;;  %v782_v17 = vor.u32 1.1754944e-38, %v781_v0  ;;  %v2180_v20 = vadd.f32 1.0, %v382_v8  ;;  %v808_v9 = vsel %vm2164_vm0, %v1500_v51, %v804_v3  ;;  %v2185_v41 = vld [vmem:[%s1884_s26 + $0x90] sm:$0xff]  ;;  %vm2198_vm5 = vmor %vm760_vm15, %vm761_vm4  ;;  %v1024_v7 = vld [vmem:[%s2008_s22 + $0xb8] sm:$0xff] }
  0x5a   : > { %v757_v57 = vsub.f32 1.0, %v756_v22  ;;  %v813_v26 = vsel %vm2128_vm12, %v812_v45, %v808_v9  ;;  %v771_v27 = vmul.f32 %v1504_v10, %v2122_v1  ;;  %v734_v29 = vand.u32 2147483647, %v2149_v60 }
  0x5b   : > { %v961_v24 = vmul.f32 0.1, %v799_v2  ;;  %v1057_v48 = vmul.f32 %v1025_v61, %v799_v2  ;;  %v736_v31 = vand.u32 2147483648, %v2149_v60  ;;  %v814_v33 = vmul.f32 %v813_v26, %v1967_v42 }
  0x5c   : > { %v758_v16 = vmul.f32 %v1502_v6, %v757_v57  ;;  %v772_v38 = vsub.f32 1.0, %v771_v27  ;;  %vm776_vm6 = vweird.f32 %v1504_v10  ;;  %1507 = vrcp.f32 %v2180_v20  ;;  %v2250_v57 = vld [vmem:[%s1884_s26 + $0x80] sm:$0xff] }
  0x5d   : > { %v993_v32 = vadd.f32 %v961_v24, %v2102_v15  ;;  %v1089_v28 = vmul.f32 0.0, %v1057_v48  ;;  %v1506_v34 = vpop.eup %1505  ;;  %v379_v44 = vand.u32 2147483647, %v2185_v41  ;;  %v962_v15 = vmul.f32 0.1, %v814_v33  ;;  %vm2216_vm9 = vmor %vm775_vm2, %vm776_vm6  ;;  %v1021_v48 = vld [vmem:[%s2008_s22 + $0xa0] sm:$0xff] }
  0x5e   : > { %v1058_v50 = vmul.f32 %v1026_v36, %v814_v33  ;;  %v759_v42 = vadd.f32 %v1502_v6, %v758_v16  ;;  %v773_v51 = vmul.f32 %v1504_v10, %v772_v38  ;;  %v726_v43 = vmul.f32 %v1506_v34, %v2149_v60 }
  0x5f   : > { %v1121_v47 = vadd.f32 %v1089_v28, %v993_v32  ;;  %vm730_vm7 = vweird.f32 %v2149_v60  ;;  %vm2206_vm8 = vcmp.eq.f32.partialorder %v734_v29, 8.507059e+37  ;;  %v994_v53 = vadd.f32 %v962_v15, %v2115_v37 }
  0x60   : > { %v1090_v54 = vmul.f32 0.0, %v1058_v50  ;;  %v763_v39 = vsel %vm2198_vm5, %v1502_v6, %v759_v42  ;;  %v737_v13 = vor.u32 1.1754944e-38, %v736_v31  ;;  %v774_v45 = vadd.f32 %v1504_v10, %v773_v51  ;;  %v1022_v51 = vld [vmem:[%s2008_s22 + $0xa8] sm:$0xff] }
  0x61   : > { %1372 = vmatpush.xpose.msra.mxu2 %v1121_v47  ;;  %1138 = vmatpush.xpose.msra.mxu0 %v1121_v47  ;;  %v768_v4 = vsel %vm2168_vm1, %v767_v12, %v763_v39  ;;  %v727_v52 = vsub.f32 1.0, %v726_v43  ;;  %vm731_vm10 = vweird.f32 %v1506_v34  ;;  %vm745_vm11 = vweird.f32 %v2180_v20  ;;  %v2274_v47 = vld [vmem:[%s1884_s26 + $0x88] sm:$0xff] }
  0x62   : > { %v1122_v37 = vadd.f32 %v1090_v54, %v994_v53  ;;  %v769_v58 = vmul.f32 %v768_v4, %v2088_v23  ;;  %v2225_v1 = vadd.f32 1.0, %v379_v44  ;;  %v1508_v59 = vpop.eup %1507  ;;  %v778_v18 = vsel %vm2216_vm9, %v1504_v10, %v774_v45  ;;  %vm732_vm12 = vmor %vm730_vm7, %vm731_vm10 }
  0x63   : > { %v728_v0 = vmul.f32 %v1506_v34, %v727_v52  ;;  %v749_v8 = vand.u32 2147483647, %v2180_v20  ;;  %v751_v62 = vand.u32 2147483648, %v2180_v20  ;;  %v783_v23 = vsel %vm2176_vm3, %v782_v17, %v778_v18 }
  0x64   : > { %1388 = vmatpush.xpose.msra.mxu3 %v1122_v37  ;;  %v959_v63 = vmul.f32 0.1, %v769_v58  ;;  %v1055_v6 = vmul.f32 %v1023_v56, %v769_v58  ;;  %1161 = vmatpush.xpose.msra.mxu1 %v1122_v37  ;;  %v741_v61 = vmul.f32 %v1508_v59, %v2180_v20  ;;  %v784_v11 = vmul.f32 %v783_v23, %v2091_v25 }
  0x65   : > { %v729_v19 = vadd.f32 %v1506_v34, %v728_v0  ;;  %1509 = vrcp.f32 %v2225_v1  ;;  %v380_v2 = vand.u32 2147483647, %v2228_v30  ;;  %vm746_vm13 = vweird.f32 %v1508_v59 }
  0x66   : > { %v991_v3 = vadd.f32 %v959_v63, %v2133_v49  ;;  %v1087_v22 = vmul.f32 0.0, %v1055_v6  ;;  %v742_v12 = vsub.f32 1.0, %v741_v61  ;;  %v960_v10 = vmul.f32 0.1, %v784_v11  ;;  %vm2256_vm14 = vmor %vm745_vm11, %vm746_vm13 }
  0x67   : > { %v1056_v14 = vmul.f32 %v1024_v7, %v784_v11  ;;  %v733_v60 = vsel %vm732_vm12, %v1506_v34, %v729_v19  ;;  %v925_v25 = vmul.f32 2.0, %v2118_v21  ;;  %v752_v29 = vor.u32 1.1754944e-38, %v751_v62  ;;  %v2306_v7 = vld [vmem:[%s1884_s26 + $0x70] sm:$0xff] }
  0x68   : > { %v1119_v17 = vadd.f32 %v1087_v22, %v991_v3  ;;  %v738_v24 = vsel %vm2206_vm8, %v737_v13, %v733_v60  ;;  %v743_v9 = vmul.f32 %v1508_v59, %v742_v12  ;;  %v992_v26 = vadd.f32 %v960_v10, %v2156_v5  ;;  %v2315_v3 = vld [vmem:[%s1884_s26 + $0x78] sm:$0xff]  ;;  %v1019_v12 = vld [vmem:[%s2008_s22 + $0x90] sm:$0xff] }
  0x69   : > { %v1088_v36 = vmul.f32 0.0, %v1056_v14  ;;  %v739_v49 = vmul.f32 %v738_v24, %v2118_v21  ;;  %vm2260_vm15 = vcmp.eq.f32.partialorder %v749_v8, 8.507059e+37  ;;  %v926_v28 = vmul.f32 2.0, %v2136_v55 }
  0x6a   : > { %1373 = vmatpush.xpose.msra.mxu2 %v1119_v17  ;;  %v744_v31 = vadd.f32 %v1508_v59, %v743_v9  ;;  %1139 = vmatpush.xpose.msra.mxu0 %v1119_v17  ;;  %v2265_v5 = vadd.f32 1.0, %v380_v2  ;;  %v377_v34 = vand.u32 2147483647, %v2250_v57  ;;  %v704_v44 = vand.u32 2147483647, %v2225_v1 }
  0x6b   : > { %v1510_v21 = vpop.eup %1509  ;;  %v1120_v20 = vadd.f32 %v1088_v36, %v992_v26  ;;  %v957_v33 = vmul.f32 0.1, %v739_v49  ;;  %v1053_v16 = vmul.f32 %v1021_v48, %v739_v49  ;;  %v706_v43 = vand.u32 2147483648, %v2225_v1  ;;  %v2414_v49 = vld [vmem:[%s1884_s26 + $0x68] sm:$0xff] }
  0x6c   : > { %v748_v35 = vsel %vm2256_vm14, %v1508_v59, %v744_v31  ;;  %v696_v38 = vmul.f32 %v1510_v21, %v2225_v1  ;;  %1511 = vrcp.f32 %v2265_v5  ;;  %vm700_vm0 = vweird.f32 %v2225_v1 }
  0x6d   : > { %1389 = vmatpush.xpose.msra.mxu3 %v1120_v20  ;;  %v989_v15 = vadd.f32 %v957_v33, %v925_v25  ;;  %v1085_v50 = vmul.f32 0.0, %v1053_v16  ;;  %v753_v42 = vsel %vm2260_vm15, %v752_v29, %v748_v35  ;;  %1162 = vmatpush.xpose.msra.mxu1 %v1120_v20  ;;  %vm701_vm1 = vweird.f32 %v1510_v21 }
  0x6e   : > { %v754_v46 = vmul.f32 %v753_v42, %v2136_v55  ;;  %v697_v53 = vsub.f32 1.0, %v696_v38  ;;  %v923_v39 = vmul.f32 2.0, %v2185_v41  ;;  %v2283_v40 = vadd.f32 1.0, %v377_v34  ;;  %vm2290_vm4 = vmor %vm700_vm0, %vm701_vm1 }
  0x6f   : > { %v1117_v54 = vadd.f32 %v1085_v50, %v989_v15  ;;  %v378_v13 = vand.u32 2147483647, %v2274_v47  ;;  %vm2286_vm2 = vcmp.eq.f32.partialorder %v704_v44, 8.507059e+37  ;;  %v707_v37 = vor.u32 1.1754944e-38, %v706_v43  ;;  %v1020_v50 = vld [vmem:[%s2008_s22 + $0x98] sm:$0xff] }
  0x70   : > { %v958_v4 = vmul.f32 0.1, %v754_v46  ;;  %v1054_v56 = vmul.f32 %v1022_v51, %v754_v46  ;;  %v698_v45 = vmul.f32 %v1510_v21, %v697_v53  ;;  %v719_v58 = vand.u32 2147483647, %v2265_v5  ;;  %v1015_v46 = vld [vmem:[%s2008_s22 + $0x70] sm:$0xff] }
  0x71   : > { %1374 = vmatpush.xpose.msra.mxu2 %v1117_v54  ;;  %v2296_v1 = vmul.f32 2.0, %v2228_v30  ;;  %1140 = vmatpush.xpose.msra.mxu0 %v1117_v54  ;;  %1513 = vrcp.f32 %v2283_v40  ;;  %v721_v62 = vand.u32 2147483648, %v2265_v5  ;;  %vm715_vm3 = vweird.f32 %v2265_v5 }
  0x72   : > { %v1512_v59 = vpop.eup %1511  ;;  %v990_v18 = vadd.f32 %v958_v4, %v926_v28  ;;  %v1086_v0 = vmul.f32 0.0, %v1054_v56  ;;  %v699_v8 = vadd.f32 %v1510_v21, %v698_v45  ;;  %v674_v6 = vand.u32 2147483647, %v2283_v40 }
  0x73   : > { %v711_v63 = vmul.f32 %v1512_v59, %v2265_v5  ;;  %v2303_v23 = vadd.f32 1.0, %v378_v13  ;;  %v676_v19 = vand.u32 2147483648, %v2283_v40  ;;  %v2312_v2 = vmul.f32 2.0, %v2250_v57 }
  0x74   : > { %v1118_v61 = vadd.f32 %v1086_v0, %v990_v18  ;;  %v703_v11 = vsel %vm2290_vm4, %v1510_v21, %v699_v8  ;;  %vm716_vm5 = vweird.f32 %v1512_v59  ;;  %vm2322_vm6 = vcmp.eq.f32.partialorder %v719_v58, 8.507059e+37  ;;  %v1017_v8 = vld [vmem:[%s2008_s22 + $0x80] sm:$0xff] }
  0x75   : > { %v708_v22 = vsel %vm2286_vm2, %v707_v37, %v703_v11  ;;  %v712_v10 = vsub.f32 1.0, %v711_v63  ;;  %1515 = vrcp.f32 %v2303_v23  ;;  %v722_v17 = vor.u32 1.1754944e-38, %v721_v62  ;;  %vm2336_vm9 = vmor %vm715_vm3, %vm716_vm5 }
  0x76   : > { %1390 = vmatpush.xpose.msra.mxu3 %v1118_v61  ;;  %v709_v14 = vmul.f32 %v708_v22, %v2185_v41  ;;  %1163 = vmatpush.xpose.msra.mxu1 %v1118_v61  ;;  %v375_v24 = vand.u32 2147483647, %v2306_v7  ;;  %vm670_vm7 = vweird.f32 %v2283_v40  ;;  %vm2328_vm8 = vcmp.eq.f32.partialorder %v674_v6, 8.507059e+37 }
  0x77   : > { %v1514_v25 = vpop.eup %1513  ;;  %v713_v48 = vmul.f32 %v1512_v59, %v712_v10  ;;  %v376_v26 = vand.u32 2147483647, %v2315_v3  ;;  %v677_v29 = vor.u32 1.1754944e-38, %v676_v19  ;;  %v2342_v32 = vmul.f32 2.0, %v2274_v47 }
  0x78   : > { %v955_v36 = vmul.f32 0.1, %v709_v14  ;;  %v1051_v41 = vmul.f32 %v1019_v12, %v709_v14  ;;  %v666_v27 = vmul.f32 %v1514_v25, %v2283_v40  ;;  %vm671_vm10 = vweird.f32 %v1514_v25 }
  0x79   : > { %v714_v31 = vadd.f32 %v1512_v59, %v713_v48  ;;  %v2344_v28 = vadd.f32 1.0, %v375_v24  ;;  %v2346_v16 = vadd.f32 1.0, %v376_v26  ;;  %v689_v35 = vand.u32 2147483647, %v2303_v23  ;;  %vm2361_vm11 = vmor %vm670_vm7, %vm671_vm10  ;;  %v1018_v24 = vld [vmem:[%s2008_s22 + $0x88] sm:$0xff] }
  0x7a   : > { %v987_v21 = vadd.f32 %v955_v36, %v923_v39  ;;  %v1083_v20 = vmul.f32 0.0, %v1051_v41  ;;  %v667_v33 = vsub.f32 1.0, %v666_v27  ;;  %v691_v38 = vand.u32 2147483648, %v2303_v23  ;;  %v2371_v39 = vld [vmem:[%s1884_s26 + $0x60] sm:$0xff] }
  0x7b   : > { %v1516_v5 = vpop.eup %1515  ;;  %v718_v34 = vsel %vm2336_vm9, %v1512_v59, %v714_v31  ;;  %1517 = vrcp.f32 %v2344_v28  ;;  %vm685_vm12 = vweird.f32 %v2303_v23  ;;  %v644_v53 = vand.u32 2147483647, %v2344_v28 }
  0x7c   : > { %v1115_v44 = vadd.f32 %v1083_v20, %v987_v21  ;;  %v723_v15 = vsel %vm2322_vm6, %v722_v17, %v718_v34  ;;  %v668_v42 = vmul.f32 %v1514_v25, %v667_v33  ;;  %v681_v51 = vmul.f32 %v1516_v5, %v2303_v23  ;;  %v2425_v33 = vld [vmem:[%s1884_s26 + $0x50] sm:$0xff] }
  0x7d   : > { %v724_v43 = vmul.f32 %v723_v15, %v2228_v30  ;;  %v2368_v54 = vmul.f32 2.0, %v2306_v7  ;;  %vm686_vm13 = vweird.f32 %v1516_v5  ;;  %1519 = vrcp.f32 %v2346_v16 }
  0x7e   : > { %1375 = vmatpush.xpose.msra.mxu2 %v1115_v44  ;;  %v669_v13 = vadd.f32 %v1514_v25, %v668_v42  ;;  %v682_v4 = vsub.f32 1.0, %v681_v51  ;;  %1141 = vmatpush.xpose.msra.mxu0 %v1115_v44  ;;  %vm2374_vm14 = vcmp.eq.f32.partialorder %v689_v35, 8.507059e+37  ;;  %v692_v45 = vor.u32 1.1754944e-38, %v691_v38  ;;  %vm2389_vm0 = vmor %vm685_vm12, %vm686_vm13 }
  0x7f   : > { %v956_v30 = vmul.f32 0.1, %v724_v43  ;;  %v1052_v40 = vmul.f32 %v1020_v50, %v724_v43  ;;  %vm640_vm15 = vweird.f32 %v2344_v28  ;;  %v373_v37 = vand.u32 2147483647, %v2371_v39 }
  0x80   : > { %v673_v52 = vsel %vm2361_vm11, %v1514_v25, %v669_v13  ;;  %v683_v55 = vmul.f32 %v1516_v5, %v682_v4  ;;  %vm2393_vm1 = vcmp.eq.f32.partialorder %v644_v53, 8.507059e+37  ;;  %v646_v11 = vand.u32 2147483648, %v2344_v28 }
  0x81   : > { %v1518_v58 = vpop.eup %1517  ;;  %v988_v59 = vadd.f32 %v956_v30, %v2296_v1  ;;  %v1084_v18 = vmul.f32 0.0, %v1052_v40  ;;  %v678_v0 = vsel %vm2328_vm8, %v677_v29, %v673_v52  ;;  %v659_v23 = vand.u32 2147483647, %v2346_v16 }
  0x82   : > { %v679_v6 = vmul.f32 %v678_v0, %v2250_v57  ;;  %v684_v1 = vadd.f32 %v1516_v5, %v683_v55  ;;  %v636_v61 = vmul.f32 %v1518_v58, %v2344_v28  ;;  %vm641_vm2 = vweird.f32 %v1518_v58 }
  0x83   : > { %v1116_v19 = vadd.f32 %v1084_v18, %v988_v59  ;;  %v2401_v22 = vadd.f32 1.0, %v373_v37  ;;  %v1520_v12 = vpop.eup %1519  ;;  %v661_v48 = vand.u32 2147483648, %v2346_v16  ;;  %vm2419_vm4 = vmor %vm640_vm15, %vm641_vm2  ;;  %v647_v29 = vor.u32 1.1754944e-38, %v646_v11 }
  0x84   : > { %v953_v10 = vmul.f32 0.1, %v679_v6  ;;  %v1049_v14 = vmul.f32 %v1017_v8, %v679_v6  ;;  %v688_v60 = vsel %vm2389_vm0, %v1516_v5, %v684_v1  ;;  %v637_v17 = vsub.f32 1.0, %v636_v61  ;;  %v2465_v1 = vld [vmem:[%s1884_s26 + $0x58] sm:$0xff] }
  0x85   : > { %1391 = vmatpush.xpose.msra.mxu3 %v1116_v19  ;;  %v693_v57 = vsel %vm2374_vm14, %v692_v45, %v688_v60  ;;  %1164 = vmatpush.xpose.msra.mxu1 %v1116_v19  ;;  %v651_v25 = vmul.f32 %v1520_v12, %v2346_v16  ;;  %1521 = vrcp.f32 %v2401_v22  ;;  %vm655_vm3 = vweird.f32 %v2346_v16 }
  0x86   : > { %v985_v9 = vadd.f32 %v953_v10, %v2312_v2  ;;  %v1081_v26 = vmul.f32 0.0, %v1049_v14  ;;  %v694_v36 = vmul.f32 %v693_v57, %v2274_v47  ;;  %v638_v41 = vmul.f32 %v1518_v58, %v637_v17  ;;  %v2482_v57 = vld [vmem:[%s1884_s26 + $0x40] sm:$0xff] }
  0x87   : > { %v652_v31 = vsub.f32 1.0, %v651_v25  ;;  %vm656_vm5 = vweird.f32 %v1520_v12  ;;  %vm2427_vm6 = vcmp.eq.f32.partialorder %v659_v23, 8.507059e+37  ;;  %v662_v28 = vor.u32 1.1754944e-38, %v661_v48 }
  0x88   : > { %v1113_v21 = vadd.f32 %v1081_v26, %v985_v9  ;;  %v954_v2 = vmul.f32 0.1, %v694_v36  ;;  %v1050_v20 = vmul.f32 %v1018_v24, %v694_v36  ;;  %v639_v47 = vadd.f32 %v1518_v58, %v638_v41  ;;  %vm2437_vm7 = vmor %vm655_vm3, %vm656_vm5  ;;  %v1013_v36 = vld [vmem:[%s2008_s22 + $0x60] sm:$0xff] }
  0x89   : > { %v653_v5 = vmul.f32 %v1520_v12, %v652_v31  ;;  %v374_v35 = vand.u32 2147483647, %v2414_v49  ;;  %v616_v42 = vand.u32 2147483648, %v2401_v22  ;;  %v371_v13 = vand.u32 2147483647, %v2425_v33 }
  0x8a   : > { %1376 = vmatpush.xpose.msra.mxu2 %v1113_v21  ;;  %v986_v38 = vadd.f32 %v954_v2, %v2342_v32  ;;  %v1082_v44 = vmul.f32 0.0, %v1050_v20  ;;  %v643_v15 = vsel %vm2419_vm4, %v1518_v58, %v639_v47  ;;  %1142 = vmatpush.xpose.msra.mxu0 %v1113_v21  ;;  %vm610_vm8 = vweird.f32 %v2401_v22 }
  0x8b   : > { %v1522_v51 = vpop.eup %1521  ;;  %v648_v43 = vsel %vm2393_vm1, %v647_v29, %v643_v15  ;;  %v654_v32 = vadd.f32 %v1520_v12, %v653_v5  ;;  %v2445_v53 = vadd.f32 1.0, %v374_v35  ;;  %v614_v56 = vand.u32 2147483647, %v2401_v22 }
  0x8c   : > { %v1114_v4 = vadd.f32 %v1082_v44, %v986_v38  ;;  %v649_v16 = vmul.f32 %v648_v43, %v2306_v7  ;;  %v606_v30 = vmul.f32 %v1522_v51, %v2401_v22  ;;  %vm611_vm9 = vweird.f32 %v1522_v51  ;;  %v1016_v7 = vld [vmem:[%s2008_s22 + $0x78] sm:$0xff] }
  0x8d   : > { %v658_v40 = vsel %vm2437_vm7, %v1520_v12, %v654_v32  ;;  %1523 = vrcp.f32 %v2445_v53  ;;  %v920_v59 = vmul.f32 2.0, %v2315_v3  ;;  %v617_v18 = vor.u32 1.1754944e-38, %v616_v42  ;;  %vm2470_vm10 = vmor %vm610_vm8, %vm611_vm9 }
  0x8e   : > { %1392 = vmatpush.xpose.msra.mxu3 %v1114_v4  ;;  %v951_v45 = vmul.f32 0.1, %v649_v16  ;;  %v1047_v52 = vmul.f32 %v1015_v46, %v649_v16  ;;  %v663_v55 = vsel %vm2427_vm6, %v662_v28, %v658_v40  ;;  %1165 = vmatpush.xpose.msra.mxu1 %v1114_v4  ;;  %v607_v37 = vsub.f32 1.0, %v606_v30  ;;  %v2513_v46 = vld [vmem:[%s1884_s26 + $0x48] sm:$0xff] }
  0x8f   : > { %v664_v58 = vmul.f32 %v663_v55, %v2315_v3  ;;  %v2460_v0 = vadd.f32 1.0, %v371_v13  ;;  %v629_v6 = vand.u32 2147483647, %v2445_v53  ;;  %v631_v3 = vand.u32 2147483648, %v2445_v53 }
  0x90   : > { %v983_v8 = vadd.f32 %v951_v45, %v2368_v54  ;;  %v1079_v62 = vmul.f32 0.0, %v1047_v52  ;;  %v608_v63 = vmul.f32 %v1522_v51, %v607_v37  ;;  %vm615_vm11 = vcmp.eq.f32.partialorder %v614_v56, 8.507059e+37  ;;  %v1014_v52 = vld [vmem:[%s2008_s22 + $0x68] sm:$0xff] }
  0x91   : > { %v952_v61 = vmul.f32 0.1, %v664_v58  ;;  %v1048_v11 = vmul.f32 %v1016_v7, %v664_v58  ;;  %1525 = vrcp.f32 %v2460_v0  ;;  %v917_v12 = vmul.f32 2.0, %v2371_v39 }
  0x92   : > { %v1111_v54 = vadd.f32 %v1079_v62, %v983_v8  ;;  %v609_v23 = vadd.f32 %v1522_v51, %v608_v63  ;;  %v2478_v17 = vmul.f32 2.0, %v2414_v49  ;;  %v372_v22 = vand.u32 2147483647, %v2465_v1  ;;  %v2545_v8 = vld [vmem:[%s1884_s26 + $0x30] sm:$0xff] }
  0x93   : > { %v1524_v10 = vpop.eup %1523  ;;  %v984_v14 = vadd.f32 %v952_v61, %v920_v59  ;;  %v1080_v60 = vmul.f32 0.0, %v1048_v11  ;;  %vm625_vm12 = vweird.f32 %v2445_v53  ;;  %vm2488_vm13 = vcmp.eq.f32.partialorder %v629_v6, 8.507059e+37 }
  0x94   : > { %1377 = vmatpush.xpose.msra.mxu2 %v1111_v54  ;;  %v613_v24 = vsel %vm2470_vm10, %v1522_v51, %v609_v23  ;;  %v621_v25 = vmul.f32 %v1524_v10, %v2445_v53  ;;  %1143 = vmatpush.xpose.msra.mxu0 %v1111_v54  ;;  %v632_v41 = vor.u32 1.1754944e-38, %v631_v3  ;;  %v2493_v27 = vadd.f32 1.0, %v372_v22  ;;  %v1011_v23 = vld [vmem:[%s2008_s22 + $0x50] sm:$0xff] }
  0x95   : > { %v1112_v9 = vadd.f32 %v1080_v60, %v984_v14  ;;  %v618_v26 = vsel %vm615_vm11, %v617_v18, %v613_v24  ;;  %vm626_vm14 = vweird.f32 %v1524_v10  ;;  %v369_v21 = vand.u32 2147483647, %v2482_v57  ;;  %v2562_v24 = vld [vmem:[%s1884_s26 + $0x38] sm:$0xff] }
  0x96   : > { %v619_v29 = vmul.f32 %v618_v26, %v2371_v39  ;;  %v622_v31 = vsub.f32 1.0, %v621_v25  ;;  %vm580_vm15 = vweird.f32 %v2460_v0  ;;  %v584_v20 = vand.u32 2147483647, %v2460_v0  ;;  %vm2504_vm0 = vmor %vm625_vm12, %vm626_vm14  ;;  %v1010_v25 = vld [vmem:[%s2008_s22 + $0x48] sm:$0xff] }
  0x97   : > { %v1526_v2 = vpop.eup %1525  ;;  %1393 = vmatpush.xpose.msra.mxu3 %v1112_v9  ;;  %1166 = vmatpush.xpose.msra.mxu1 %v1112_v9  ;;  %v586_v47 = vand.u32 2147483648, %v2460_v0  ;;  %1527 = vrcp.f32 %v2493_v27  ;;  %v599_v38 = vand.u32 2147483647, %v2493_v27  ;;  %v601_v44 = vand.u32 2147483648, %v2493_v27 }
  0x98   : > { %v949_v5 = vmul.f32 0.1, %v619_v29  ;;  %v1045_v34 = vmul.f32 %v1013_v36, %v619_v29  ;;  %v623_v28 = vmul.f32 %v1524_v10, %v622_v31  ;;  %v576_v39 = vmul.f32 %v1526_v2, %v2460_v0 }
  0x99   : > { %vm581_vm1 = vweird.f32 %v1526_v2  ;;  %v2510_v15 = vadd.f32 1.0, %v369_v21  ;;  %vm2515_vm2 = vcmp.eq.f32.partialorder %v584_v20, 8.507059e+37  ;;  %v587_v53 = vor.u32 1.1754944e-38, %v586_v47 }
  0x9a   : > { %v981_v50 = vadd.f32 %v949_v5, %v917_v12  ;;  %v1077_v42 = vmul.f32 0.0, %v1045_v34  ;;  %v624_v51 = vadd.f32 %v1524_v10, %v623_v28  ;;  %v577_v43 = vsub.f32 1.0, %v576_v39  ;;  %vm2532_vm4 = vmor %vm580_vm15, %vm581_vm1  ;;  %v1012_v39 = vld [vmem:[%s2008_s22 + $0x58] sm:$0xff] }
  0x9b   : > { %v915_v13 = vmul.f32 2.0, %v2425_v33  ;;  %1529 = vrcp.f32 %v2510_v15  ;;  %v2524_v40 = vmul.f32 2.0, %v2465_v1  ;;  %vm595_vm3 = vweird.f32 %v2493_v27 }
  0x9c   : > { %v1109_v4 = vadd.f32 %v1077_v42, %v981_v50  ;;  %v628_v16 = vsel %vm2504_vm0, %v1524_v10, %v624_v51  ;;  %v578_v30 = vmul.f32 %v1526_v2, %v577_v43  ;;  %vm2537_vm5 = vcmp.eq.f32.partialorder %v599_v38, 8.507059e+37  ;;  %v2603_v43 = vld [vmem:[%s1884_s26 + $0x20] sm:$0xff]  ;;  %v1007_v50 = vld [vmem:[%s2008_s22 + $0x30] sm:$0xff] }
  0x9d   : > { %v1528_v56 = vpop.eup %1527  ;;  %v633_v45 = vsel %vm2488_vm13, %v632_v41, %v628_v16  ;;  %v370_v37 = vand.u32 2147483647, %v2513_v46  ;;  %v602_v0 = vor.u32 1.1754944e-38, %v601_v44  ;;  %v554_v62 = vand.u32 2147483647, %v2510_v15 }
  0x9e   : > { %1378 = vmatpush.xpose.msra.mxu2 %v1109_v4  ;;  %v634_v58 = vmul.f32 %v633_v45, %v2414_v49  ;;  %v579_v59 = vadd.f32 %v1526_v2, %v578_v30  ;;  %v591_v18 = vmul.f32 %v1528_v56, %v2493_v27  ;;  %1144 = vmatpush.xpose.msra.mxu0 %v1109_v4  ;;  %vm596_vm6 = vweird.f32 %v1528_v56 }
  0x9f   : > { %v556_v63 = vand.u32 2147483648, %v2510_v15  ;;  %v2549_v6 = vadd.f32 1.0, %v370_v37  ;;  %vm550_vm7 = vweird.f32 %v2510_v15  ;;  %v367_v12 = vand.u32 2147483647, %v2545_v8  ;;  %vm2567_vm8 = vmor %vm595_vm3, %vm596_vm6  ;;  %v1009_v37 = vld [vmem:[%s2008_s22 + $0x40] sm:$0xff] }
  0xa0   : > { %v950_v61 = vmul.f32 0.1, %v634_v58  ;;  %v1046_v11 = vmul.f32 %v1014_v52, %v634_v58  ;;  %v583_v49 = vsel %vm2532_vm4, %v1526_v2, %v579_v59  ;;  %v592_v19 = vsub.f32 1.0, %v591_v18 }
  0xa1   : > { %v1530_v3 = vpop.eup %1529  ;;  %v588_v54 = vsel %vm2515_vm2, %v587_v53, %v583_v49  ;;  %1531 = vrcp.f32 %v2549_v6  ;;  %vm2572_vm9 = vcmp.eq.f32.partialorder %v554_v62, 8.507059e+37  ;;  %v2577_v26 = vmul.f32 2.0, %v2482_v57 }
  0xa2   : > { %v982_v10 = vadd.f32 %v950_v61, %v2478_v17  ;;  %v1078_v14 = vmul.f32 0.0, %v1046_v11  ;;  %v589_v60 = vmul.f32 %v588_v54, %v2425_v33  ;;  %v593_v22 = vmul.f32 %v1528_v56, %v592_v19 }
  0xa3   : > { %v546_v48 = vmul.f32 %v1530_v3, %v2510_v15  ;;  %v557_v17 = vor.u32 1.1754944e-38, %v556_v63  ;;  %vm551_vm10 = vweird.f32 %v1530_v3  ;;  %v2579_v31 = vadd.f32 1.0, %v367_v12 }
  0xa4   : > { %v1110_v33 = vadd.f32 %v1078_v14, %v982_v10  ;;  %v947_v36 = vmul.f32 0.1, %v589_v60  ;;  %v1043_v41 = vmul.f32 %v1011_v23, %v589_v60  ;;  %v594_v29 = vadd.f32 %v1528_v56, %v593_v22  ;;  %vm2596_vm12 = vmor %vm550_vm7, %vm551_vm10 }
  0xa5   : > { %v547_v27 = vsub.f32 1.0, %v546_v48  ;;  %v368_v21 = vand.u32 2147483647, %v2562_v24  ;;  %v2585_v5 = vmul.f32 2.0, %v2513_v46  ;;  %vm565_vm11 = vweird.f32 %v2549_v6 }
  0xa6   : > { %1394 = vmatpush.xpose.msra.mxu3 %v1110_v33  ;;  %v979_v2 = vadd.f32 %v947_v36, %v915_v13  ;;  %v1075_v20 = vmul.f32 0.0, %v1043_v41  ;;  %v598_v47 = vsel %vm2567_vm8, %v1528_v56, %v594_v29  ;;  %1167 = vmatpush.xpose.msra.mxu1 %v1110_v33  ;;  %1533 = vrcp.f32 %v2579_v31 }
  0xa7   : > { %v1532_v34 = vpop.eup %1531  ;;  %v603_v28 = vsel %vm2537_vm5, %v602_v0, %v598_v47  ;;  %v548_v35 = vmul.f32 %v1530_v3, %v547_v27  ;;  %v569_v51 = vand.u32 2147483647, %v2549_v6  ;;  %v571_v53 = vand.u32 2147483648, %v2549_v6 }
  0xa8   : > { %v1107_v38 = vadd.f32 %v1075_v20, %v979_v2  ;;  %v604_v44 = vmul.f32 %v603_v28, %v2465_v1  ;;  %v561_v42 = vmul.f32 %v1532_v34, %v2549_v6  ;;  %vm566_vm13 = vweird.f32 %v1532_v34  ;;  %v2637_v6 = vld [vmem:[%s1884_s26 + $0x28] sm:$0xff] }
  0xa9   : > { %v549_v32 = vadd.f32 %v1530_v3, %v548_v35  ;;  %v2606_v13 = vadd.f32 1.0, %v368_v21  ;;  %v524_v16 = vand.u32 2147483647, %v2579_v31  ;;  %v526_v56 = vand.u32 2147483648, %v2579_v31  ;;  %vm2622_vm14 = vmor %vm565_vm11, %vm566_vm13  ;;  %v2667_v35 = vld [vmem:[%s1884_s26 + $0x10] sm:$0xff] }
  0xaa   : > { %1379 = vmatpush.xpose.msra.mxu2 %v1107_v38  ;;  %v948_v1 = vmul.f32 0.1, %v604_v44  ;;  %v1044_v15 = vmul.f32 %v1012_v39, %v604_v44  ;;  %v562_v4 = vsub.f32 1.0, %v561_v42  ;;  %1145 = vmatpush.xpose.msra.mxu0 %v1107_v38  ;;  %v365_v45 = vand.u32 2147483647, %v2603_v43  ;;  %v2670_v38 = vld [vmem:[%s1884_s26 + $0x18] sm:$0xff] }
  0xab   : > { %v553_v30 = vsel %vm2596_vm12, %v1530_v3, %v549_v32  ;;  %1535 = vrcp.f32 %v2606_v13  ;;  %vm2626_vm15 = vcmp.eq.f32.partialorder %v569_v51, 8.507059e+37  ;;  %vm520_vm0 = vweird.f32 %v2579_v31 }
  0xac   : > { %v980_v52 = vadd.f32 %v948_v1, %v2524_v40  ;;  %v1076_v55 = vmul.f32 0.0, %v1044_v15  ;;  %v558_v7 = vsel %vm2572_vm9, %v557_v17, %v553_v30  ;;  %v563_v58 = vmul.f32 %v1532_v34, %v562_v4  ;;  %v1534_v59 = vpop.eup %1533 }
  0xad   : > { %v559_v18 = vmul.f32 %v558_v7, %v2482_v57  ;;  %v572_v40 = vor.u32 1.1754944e-38, %v571_v53  ;;  %v516_v11 = vmul.f32 %v1534_v59, %v2579_v31  ;;  %vm2632_vm1 = vcmp.eq.f32.partialorder %v524_v16, 8.507059e+37  ;;  %v2710_v57 = vld [vmem:[%s1884_s26] sm:$0xff] }
  0xae   : > { %v1108_v63 = vadd.f32 %v1076_v55, %v980_v52  ;;  %v564_v61 = vadd.f32 %v1532_v34, %v563_v58  ;;  %v527_v3 = vor.u32 1.1754944e-38, %v526_v56  ;;  %vm535_vm2 = vweird.f32 %v2606_v13 }
  0xaf   : > { %v945_v49 = vmul.f32 0.1, %v559_v18  ;;  %v1041_v19 = vmul.f32 %v1009_v37, %v559_v18  ;;  %v517_v23 = vsub.f32 1.0, %v516_v11  ;;  %vm521_vm4 = vweird.f32 %v1534_v59  ;;  %v1008_v37 = vld [vmem:[%s2008_s22 + $0x38] sm:$0xff] }
  0xb0   : > { %1395 = vmatpush.xpose.msra.mxu3 %v1108_v63  ;;  %v568_v54 = vsel %vm2622_vm14, %v1532_v34, %v564_v61  ;;  %1168 = vmatpush.xpose.msra.mxu1 %v1108_v63  ;;  %v2642_v12 = vadd.f32 1.0, %v365_v45  ;;  %v366_v48 = vand.u32 2147483647, %v2637_v6  ;;  %v539_v36 = vand.u32 2147483647, %v2606_v13  ;;  %vm2654_vm3 = vmor %vm520_vm0, %vm521_vm4 }
  0xb1   : > { %v1536_v10 = vpop.eup %1535  ;;  %v977_v14 = vadd.f32 %v945_v49, %v2577_v26  ;;  %v1073_v60 = vmul.f32 0.0, %v1041_v19  ;;  %v573_v22 = vsel %vm2626_vm15, %v572_v40, %v568_v54  ;;  %v518_v17 = vmul.f32 %v1534_v59, %v517_v23 }
  0xb2   : > { %v574_v9 = vmul.f32 %v573_v22, %v2513_v46  ;;  %v531_v33 = vmul.f32 %v1536_v10, %v2606_v13  ;;  %vm536_vm5 = vweird.f32 %v1536_v10  ;;  %v541_v26 = vand.u32 2147483648, %v2606_v13 }
  0xb3   : > { %v1105_v41 = vadd.f32 %v1073_v60, %v977_v14  ;;  %1537 = vrcp.f32 %v2642_v12  ;;  %v519_v21 = vadd.f32 %v1534_v59, %v518_v17  ;;  %v911_v20 = vmul.f32 2.0, %v2545_v8  ;;  %vm2678_vm6 = vmor %vm535_vm2, %vm536_vm5 }
  0xb4   : > { %v946_v46 = vmul.f32 0.1, %v574_v9  ;;  %v1042_v27 = vmul.f32 %v1010_v25, %v574_v9  ;;  %v532_v2 = vsub.f32 1.0, %v531_v33  ;;  %v2661_v31 = vadd.f32 1.0, %v366_v48 }
  0xb5   : > { %1380 = vmatpush.xpose.msra.mxu2 %v1105_v41  ;;  %1146 = vmatpush.xpose.msra.mxu0 %v1105_v41  ;;  %v523_v28 = vsel %vm2654_vm3, %v1534_v59, %v519_v21  ;;  %vm2682_vm7 = vcmp.eq.f32.partialorder %v539_v36, 8.507059e+37  ;;  %v542_v51 = vor.u32 1.1754944e-38, %v541_v26  ;;  %v494_v15 = vand.u32 2147483647, %v2642_v12  ;;  %v1005_v41 = vld [vmem:[%s2008_s22 + $0x20] sm:$0xff] }
  0xb6   : > { %v978_v47 = vadd.f32 %v946_v46, %v2585_v5  ;;  %v1074_v34 = vmul.f32 0.0, %v1042_v27  ;;  %v533_v39 = vmul.f32 %v1536_v10, %v532_v2  ;;  %v528_v44 = vsel %vm2632_vm1, %v527_v3, %v523_v28  ;;  %v2734_v46 = vld [vmem:[%s1884_s26 + $0x8] sm:$0xff]  ;;  %s1655_s26 = scalar_lea.hbm %s1654_s23, 16 }
  0xb7   : > { %1539 = vrcp.f32 %v2661_v31  ;;  %v529_v53 = vmul.f32 %v528_v44, %v2545_v8  ;;  %v496_v13 = vand.u32 2147483648, %v2642_v12  ;;  %v363_v16 = vand.u32 2147483647, %v2667_v35  ;;  %p1656_p8 = scmp.ne.s32.totalorder %s1654_s23, %s1655_s26  ;;  %p1661_p12 = scmp.lt.s32.totalorder %s1659_s30, %s1655_s26 }
  0xb8   : > { %v1106_v32 = vadd.f32 %v1074_v34, %v978_v47  ;;  %v534_v1 = vadd.f32 %v1536_v10, %v533_v39  ;;  %v364_v30 = vand.u32 2147483647, %v2670_v38  ;;  %v912_v7 = vmul.f32 2.0, %v2562_v24 }
  0xb9   : > { %v1538_v4 = vpop.eup %1537  ;;  %v943_v56 = vmul.f32 0.1, %v529_v53  ;;  %v1039_v45 = vmul.f32 %v1007_v50, %v529_v53  ;;  %vm490_vm8 = vweird.f32 %v2642_v12  ;;  %vm2701_vm10 = vcmp.eq.f32.partialorder %v494_v15, 8.507059e+37  ;;  %v1006_v15 = vld [vmem:[%s2008_s22 + $0x28] sm:$0xff]  ;;  %p1657_p9 = pnand %p1656_p8, %p1850_p0  ;;  %p1662_p13 = por %p1661_p12, %p1660_p11 }
  0xba   : > { %1396 = vmatpush.xpose.msra.mxu3 %v1106_v32  ;;  %v538_v52 = vsel %vm2678_vm6, %v1536_v10, %v534_v1  ;;  %1169 = vmatpush.xpose.msra.mxu1 %v1106_v32  ;;  %v486_v8 = vmul.f32 %v1538_v4, %v2642_v12  ;;  %vm491_vm9 = vweird.f32 %v1538_v4  ;;  %v497_v63 = vor.u32 1.1754944e-38, %v496_v13 }
  0xbb   : > { %v543_v55 = vsel %vm2682_vm7, %v542_v51, %v538_v52  ;;  %v975_v58 = vadd.f32 %v943_v56, %v911_v20  ;;  %v1071_v59 = vmul.f32 0.0, %v1039_v45  ;;  %v2705_v61 = vadd.f32 1.0, %v363_v16  ;;  %vm2715_vm11 = vmor %vm490_vm8, %vm491_vm9  ;;  %p1658_p10 = pneg %p1657_p9 }
  0xbc   : > { %v544_v18 = vmul.f32 %v543_v55, %v2562_v24  ;;  %v487_v0 = vsub.f32 1.0, %v486_v8  ;;  %v2707_v11 = vadd.f32 1.0, %v364_v30  ;;  %v509_v10 = vand.u32 2147483647, %v2661_v31 }
  0xbd   : > { %v1540_v62 = vpop.eup %1539  ;;  %v1103_v49 = vadd.f32 %v1071_v59, %v975_v58  ;;  %v511_v14 = vand.u32 2147483648, %v2661_v31  ;;  %1541 = vrcp.f32 %v2705_v61  ;;  %v361_v12 = vand.u32 2147483647, %v2710_v57  ;;  %p1663_p3 = pnand %p1662_p13, %p1658_p10 }
  0xbe   : > { %v944_v19 = vmul.f32 0.1, %v544_v18  ;;  %v1040_v3 = vmul.f32 %v1008_v37, %v544_v18  ;;  %v488_v54 = vmul.f32 %v1538_v4, %v487_v0  ;;  %v501_v23 = vmul.f32 %v1540_v62, %v2661_v31 }
  0xbf   : > { %1381 = vmatpush.xpose.msra.mxu2 %v1103_v49  ;;  %1147 = vmatpush.xpose.msra.mxu0 %v1103_v49  ;;  %vm505_vm12 = vweird.f32 %v2661_v31  ;;  %vm506_vm13 = vweird.f32 %v1540_v62  ;;  %1543 = vrcp.f32 %v2707_v11  ;;  %v909_v36 = vmul.f32 2.0, %v2603_v43 }
  0xc0   : > { %v976_v60 = vadd.f32 %v944_v19, %v912_v7  ;;  %v1072_v22 = vmul.f32 0.0, %v1040_v3  ;;  %v489_v25 = vadd.f32 %v1538_v4, %v488_v54  ;;  %v502_v48 = vsub.f32 1.0, %v501_v23  ;;  %vm2737_vm14 = vmor %vm505_vm12, %vm506_vm13 }
  0xc1   : > { %v910_v26 = vmul.f32 2.0, %v2637_v6  ;;  %vm2741_vm15 = vcmp.eq.f32.partialorder %v509_v10, 8.507059e+37  ;;  %v512_v20 = vor.u32 1.1754944e-38, %v511_v14  ;;  %v2745_v31 = vadd.f32 1.0, %v361_v12  ;;  %v1003_v14 = vld [vmem:[%s2008_s22 + $0x10] sm:$0xff] }
  0xc2   : > { %v1104_v9 = vadd.f32 %v1072_v22, %v976_v60  ;;  %v493_v17 = vsel %vm2715_vm11, %v1538_v4, %v489_v25  ;;  %v503_v29 = vmul.f32 %v1540_v62, %v502_v48  ;;  %vm460_vm0 = vweird.f32 %v2705_v61 }
  0xc3   : > { %v498_v33 = vsel %vm2701_vm10, %v497_v63, %v493_v17  ;;  %v1542_v47 = vpop.eup %1541  ;;  %v464_v28 = vand.u32 2147483647, %v2705_v61  ;;  %v362_v42 = vand.u32 2147483647, %v2734_v46  ;;  %vm475_vm2 = vweird.f32 %v2707_v11 }
  0xc4   : > { %1397 = vmatpush.xpose.msra.mxu3 %v1104_v9  ;;  %v499_v27 = vmul.f32 %v498_v33, %v2603_v43  ;;  %1170 = vmatpush.xpose.msra.mxu1 %v1104_v9  ;;  %v504_v34 = vadd.f32 %v1540_v62, %v503_v29  ;;  %v466_v43 = vand.u32 2147483648, %v2705_v61  ;;  %v456_v50 = vmul.f32 %v1542_v47, %v2705_v61 }
  0xc5   : > { %v1544_v5 = vpop.eup %1543  ;;  %vm461_vm1 = vweird.f32 %v1542_v47  ;;  %1545 = vrcp.f32 %v2745_v31  ;;  %v479_v56 = vand.u32 2147483647, %v2707_v11  ;;  %v481_v8 = vand.u32 2147483648, %v2707_v11 }
  0xc6   : > { %v941_v39 = vmul.f32 0.1, %v499_v27  ;;  %v1037_v44 = vmul.f32 %v1005_v41, %v499_v27  ;;  %v508_v51 = vsel %vm2737_vm14, %v1540_v62, %v504_v34  ;;  %v457_v4 = vsub.f32 1.0, %v456_v50  ;;  %vm2768_vm4 = vmor %vm460_vm0, %vm461_vm1  ;;  %v1004_v41 = vld [vmem:[%s2008_s22 + $0x18] sm:$0xff] }
  0xc7   : > { %v513_v1 = vsel %vm2741_vm15, %v512_v20, %v508_v51  ;;  %v467_v16 = vor.u32 1.1754944e-38, %v466_v43  ;;  %v471_v30 = vmul.f32 %v1544_v5, %v2707_v11  ;;  %v2763_v55 = vadd.f32 1.0, %v362_v42  ;;  %v1001_v51 = vld [vmem:[%s2008_s22] sm:$0xff] }
  0xc8   : > { %v973_v32 = vadd.f32 %v941_v39, %v909_v36  ;;  %v1069_v53 = vmul.f32 0.0, %v1037_v44  ;;  %v514_v13 = vmul.f32 %v513_v1, %v2637_v6  ;;  %v458_v52 = vmul.f32 %v1542_v47, %v457_v4 }
  0xc9   : > { %v472_v6 = vsub.f32 1.0, %v471_v30  ;;  %vm476_vm3 = vweird.f32 %v1544_v5  ;;  %vm465_vm5 = vcmp.eq.f32.partialorder %v464_v28, 8.507059e+37  ;;  %v434_v18 = vand.u32 2147483647, %v2745_v31 }
  0xca   : > { %v1101_v45 = vadd.f32 %v1069_v53, %v973_v32  ;;  %v942_v7 = vmul.f32 0.1, %v514_v13  ;;  %v1038_v37 = vmul.f32 %v1006_v15, %v514_v13  ;;  %v459_v59 = vadd.f32 %v1542_v47, %v458_v52  ;;  %vm2780_vm6 = vmor %vm475_vm2, %vm476_vm3 }
  0xcb   : > { %1547 = vrcp.f32 %v2763_v55  ;;  %v1546_v0 = vpop.eup %1545  ;;  %v473_v63 = vmul.f32 %v1544_v5, %v472_v6  ;;  %v436_v61 = vand.u32 2147483648, %v2745_v31  ;;  %v907_v19 = vmul.f32 2.0, %v2667_v35 }
  0xcc   : > { %1382 = vmatpush.xpose.msra.mxu2 %v1101_v45  ;;  %1148 = vmatpush.xpose.msra.mxu0 %v1101_v45  ;;  %v974_v62 = vadd.f32 %v942_v7, %v910_v26  ;;  %v1070_v40 = vmul.f32 0.0, %v1038_v37  ;;  %v463_v49 = vsel %vm2768_vm4, %v1542_v47, %v459_v59  ;;  %v482_v54 = vor.u32 1.1754944e-38, %v481_v8  ;;  %v1002_v7 = vld [vmem:[%s2008_s22 + $0x8] sm:$0xff]  ;;  %v1133_v59 = vld [vmem:[#allocation3 + $0x10] sm:$0xff] }
  0xcd   : > { %v426_v24 = vmul.f32 %v1546_v0, %v2745_v31  ;;  %v468_v10 = vsel %vm465_vm5, %v467_v16, %v463_v49  ;;  %v474_v60 = vadd.f32 %v1544_v5, %v473_v63  ;;  %vm480_vm7 = vcmp.eq.f32.partialorder %v479_v56, 8.507059e+37  ;;  %v1134_v63 = vld [vmem:[#allocation3 + $0x18] sm:$0xff]  ;;  %v1484_v49 = vld [vmem:[%s322_s29] ss:$0 sm:$0xff] }
  0xce   : > { %v1102_v23 = vadd.f32 %v1070_v40, %v974_v62  ;;  %v469_v22 = vmul.f32 %v468_v10, %v2667_v35  ;;  %vm430_vm8 = vweird.f32 %v2745_v31  ;;  %vm431_vm9 = vweird.f32 %v1546_v0 }
  0xcf   : > { %v427_v25 = vsub.f32 1.0, %v426_v24  ;;  %v478_v11 = vsel %vm2780_vm6, %v1544_v5, %v474_v60  ;;  %v908_v12 = vmul.f32 2.0, %v2670_v38  ;;  %vm2791_vm10 = vcmp.eq.f32.partialorder %v434_v18, 8.507059e+37  ;;  %vm2799_vm11 = vmor %vm430_vm8, %vm431_vm9  ;;  %v1131_v18 = vld [vmem:[#allocation3] sm:$0xff] }
  0xd0   : > { %1398 = vmatpush.xpose.msra.mxu3 %v1102_v23  ;;  %1171 = vmatpush.xpose.msra.mxu1 %v1102_v23  ;;  %v437_v9 = vor.u32 1.1754944e-38, %v436_v61  ;;  %v939_v33 = vmul.f32 0.1, %v469_v22  ;;  %v1035_v36 = vmul.f32 %v1003_v14, %v469_v22  ;;  %v483_v35 = vsel %vm480_vm7, %v482_v54, %v478_v11 }
  0xd1   : > { %v1548_v17 = vpop.eup %1547  ;;  %v428_v29 = vmul.f32 %v1546_v0, %v427_v25  ;;  %v484_v26 = vmul.f32 %v483_v35, %v2670_v38  ;;  %vm445_vm12 = vweird.f32 %v2763_v55  ;;  %v449_v2 = vand.u32 2147483647, %v2763_v55 }
  0xd2   : > { %v441_v21 = vmul.f32 %v1548_v17, %v2763_v55  ;;  %v971_v20 = vadd.f32 %v939_v33, %v907_v19  ;;  %v1067_v47 = vmul.f32 0.0, %v1035_v36  ;;  %v451_v28 = vand.u32 2147483648, %v2763_v55 }
  0xd3   : > { %v429_v34 = vadd.f32 %v1546_v0, %v428_v29  ;;  %v940_v43 = vmul.f32 0.1, %v484_v26  ;;  %v1036_v38 = vmul.f32 %v1004_v41, %v484_v26  ;;  %vm446_vm13 = vweird.f32 %v1548_v17 }
  0xd4   : > { %v442_v39 = vsub.f32 1.0, %v441_v21  ;;  %v1099_v31 = vadd.f32 %v1067_v47, %v971_v20  ;;  %v905_v1 = vmul.f32 2.0, %v2710_v57  ;;  %vm447_vm14 = vmor %vm445_vm12, %vm446_vm13  ;;  %v452_v15 = vor.u32 1.1754944e-38, %v451_v28 }
  0xd5   : > { %v433_v44 = vsel %vm2799_vm11, %v1546_v0, %v429_v34  ;;  %v972_v50 = vadd.f32 %v940_v43, %v908_v12  ;;  %v1068_v42 = vmul.f32 0.0, %v1036_v38  ;;  %vm450_vm15 = vcmp.eq.f32.partialorder %v449_v2, 8.507059e+37 }
  0xd6   : > { %v438_v5 = vsel %vm2791_vm10, %v437_v9, %v433_v44  ;;  %v443_v32 = vmul.f32 %v1548_v17, %v442_v39  ;;  %1383 = vmatpush.xpose.msra.mxu2 %v1099_v31  ;;  %1149 = vmatpush.xpose.msra.mxu0 %v1099_v31 }
  0xd7   : > { %v439_v53 = vmul.f32 %v438_v5, %v2710_v57  ;;  %v1100_v4 = vadd.f32 %v1068_v42, %v972_v50  ;;  %v906_v57 = vmul.f32 2.0, %v2734_v46 }
  0xd8   : > { %v444_v13 = vadd.f32 %v1548_v17, %v443_v32 }
  0xd9   : > { %v937_v16 = vmul.f32 0.1, %v439_v53  ;;  %v1033_v30 = vmul.f32 %v1001_v51, %v439_v53  ;;  %1399 = vmatpush.xpose.msra.mxu3 %v1100_v4  ;;  %1172 = vmatpush.xpose.msra.mxu1 %v1100_v4 }
  0xda   : > { %v448_v56 = vsel %vm447_vm14, %v1548_v17, %v444_v13 }
  0xdb   : > { %v969_v45 = vadd.f32 %v937_v16, %v905_v1  ;;  %v1065_v52 = vmul.f32 0.0, %v1033_v30  ;;  %v453_v8 = vsel %vm450_vm15, %v452_v15, %v448_v56 }
  0xdc   : > { %v454_v37 = vmul.f32 %v453_v8, %v2734_v46  ;;  %v1132_v46 = vld [vmem:[#allocation3 + $0x8] sm:$0xff] }
  0xdd   : > { %v1097_v55 = vadd.f32 %v1065_v52, %v969_v45 }
  0xde   : > { %v938_v58 = vmul.f32 0.1, %v454_v37  ;;  %v1034_v6 = vmul.f32 %v1002_v7, %v454_v37 }
  0xdf   : > { %1384 = vmatpush.xpose.msra.mxu2 %v1097_v55  ;;  %1150 = vmatpush.xpose.msra.mxu0 %v1097_v55 }
  0xe0   : > { %v970_v0 = vadd.f32 %v938_v58, %v906_v57  ;;  %v1066_v62 = vmul.f32 0.0, %v1034_v6 }
  0xe2   : > { %v1098_v40 = vadd.f32 %v1066_v62, %v970_v0  ;;  %1154 = vmatmul.f32.vlgmr.msra.gmra.mxu2 %v1133_v59  ;;  %1151 = vmatmul.f32.vlgmr.msra.gmra.mxu0 %v1131_v18 }
  0xe4   : > { %1400 = vmatpush.xpose.msra.mxu3 %v1098_v40  ;;  %1173 = vmatpush.xpose.msra.mxu1 %v1098_v40 }
  0xe7   : > { %1177 = vmatmul.f32.vlgmr.msra.gmra.mxu3 %v1134_v63  ;;  %1174 = vmatmul.f32.vlgmr.msra.gmra.mxu1 %v1132_v46 }
 0x15f   : > { %v1152_v61 = vpop.f32.mrf.mxu0 }
 0x164   : > { %v1175_v19 = vpop.f32.mrf.mxu1 }
 0x165   : > { %v1176_v3 = vadd.f32 %v1175_v19, %v1152_v61  ;;  %v1155_v24 = vpop.f32.mrf.mxu2 }
 0x167   : > { %v1194_v54 = vadd.f32 %v1484_v49, %v1176_v3 }
 0x169   : > { %1196 = vst [vmem:[%s314_s12] sm:$0xff] %v1194_v54 }
 0x16a   : > { %v1178_v23 = vpop.f32.mrf.mxu3 }
 0x16b   : > { %v1179_v10 = vadd.f32 %v1178_v23, %v1155_v24 }
 0x16d   : > { %v1195_v14 = vadd.f32 %v1484_v49, %v1179_v10 }
 0x16f   : > { %1197 = vst [vmem:[%s314_s12 + $0x8] sm:$0xff] %v1195_v14 }
 0x170   : > { %1666 = shalt.err (!%p1663_p3)
}
 0x171   : > { %s1730_s10 = smov 128   ;;  %s1731_s25 = smov 256  }
 0x172   : > { %s1732_s7 = smov 8  }
 0x173   : > { %1409 = dma.vmem_to_hbm [thread:$0]  (%p1850_p0), %s1211_s13, 256, %s1213_s14, %s1199_s18, %s1730_s10, %s1731_s25, %s1732_s7  }
 0x174 PF: > { %s1227_s8 = sand.u32 1, %s1705_s15   ;;  %p1423_p5 = pnand %p1347_p4, %p1854_p2 }
 0x175   : > { %s1228_s9 = scalar_lea.sflag [#allocation5], %s1227_s8 }
 0x176   : > { %p1424_p6 = pneg %p1423_p5 }
 0x178   : > { %1700 = dma.done.wait (%p1424_p6), %s1228_s9, 256  }
 0x179   : > { %1702 = vsyncadd (%p1424_p6), %s1228_s9, 4294967040  ;;  %s21_s20 = sadd.s32 1, %s1725_s20   ;;  %s2987_s15 = smov %s1709_s16 }
 0x17a   : > { %p18_p1 = scmp.ge.s32.totalorder %s21_s20, 4   ;;  %s2988_s16 = smov %s1713_s17 }
 0x17b   : > { %s2989_s17 = smov %s1809_s27  ;;  %s2990_s18 = smov %s1721_s19 }
 0x17c   : > { %s2991_s19 = smov %s2993_s21  ;;  %20 = sbr.rel (!%p18_p1) target bundleno = 7 (0x7), region = 109 }
 0x181   :  { %1234 = vsyncpa [#allocation4], 1 }
 0x182   :  { %1236 = vsyncpa [#allocation4 + $0x1], 1 }
 0x183   :  { %1237 = vsyncpa [#allocation7], 1 }
 0x184   :  { %1239 = vsyncpa [#allocation7 + $0x1], 1 }
 0x185   :  { %1240 = vsyncpa [#allocation5], 1 }
 0x186   :  { %1242 = vsyncpa [#allocation5 + $0x1], 1 }

</bundles_post_ra>
